<compile_context>
chip_gen: v7x
topology: tpu7x:2x2x1
jax: 0.10.0
libtpu: 0.0.40
codegen_flags: <defaults>
</compile_context>

<pallas_src>
import functools
import math

import jax
import jax.numpy as jnp
from jax import lax
from jax.experimental import pallas as pl
from jax.experimental.pallas import tpu as pltpu


def _round_up(x, m):
    return x + (-x) % m


def _make_kernel(tile_offsets, n_taps, cout_p, thw):
    """tile_offsets: per row tile, a tuple of n_taps static flat offsets into
    the padded, flattened (Cin_p, Hpad*Wp) input."""

    def tile_body(xp_ref, w_ref, b_ref, o_ref, offs):
        # Bias initialises the accumulator (saves a full-size add pass).
        acc = jnp.broadcast_to(b_ref[...], (cout_p, thw))           # f32
        for ti in range(n_taps):                                    # 27 static taps
            x_win = xp_ref[0, :, pl.ds(offs[ti], thw)]              # (Cin_p, Th*Wp)
            acc = acc + jnp.dot(w_ref[ti], x_win,
                                preferred_element_type=jnp.float32)
        o_ref[0] = acc.astype(o_ref.dtype)                          # lane-dense store

    nt = len(tile_offsets)

    def kernel(xp_ref, w_ref, b_ref, o_ref):
        if nt == 1:
            tile_body(xp_ref, w_ref, b_ref, o_ref, tile_offsets[0])
        else:
            t = pl.program_id(1)
            # One statically-offset body per row tile, gated by pl.when; only
            # the matching branch runs, every lane offset stays compile-time.
            for tt, offs in enumerate(tile_offsets):
                pl.when(t == tt)(
                    functools.partial(tile_body, xp_ref, w_ref, b_ref, o_ref, offs))

    return kernel


def aspp_sum_pallas(x_nchw, weights, biases, rates, out_dtype=None):
    """x_nchw: (N, Cin, H, W). weights[i]: (Cout, Cin, 3, 3). biases[i]: (Cout,)."""
    N, Cin, H, W = x_nchw.shape
    Cout = weights[0].shape[0]
    n_rates = len(rates)
    rmax = max(rates)
    n_taps = n_rates * 9
    dt = x_nchw.dtype
    # TODO(synk): pass out_dtype=jnp.bfloat16 if the downstream consumer accepts it.
    out_dtype = dt if out_dtype is None else out_dtype
    isz = jnp.dtype(dt).itemsize
    osz = jnp.dtype(out_dtype).itemsize

    # Channel padding to the sublane granule (no-op at realistic Cin/Cout).
    Cin_p = _round_up(Cin, 8)
    Cout_p = _round_up(Cout, 8)

    # Width padding: multiple of 8, NOT 128.
    Wp = _round_up(W + 2 * rmax, 8)

    # Smallest row-tile granule g that guarantees Th*Wp % 128 == 0 for any H.
    g = 128 // math.gcd(Wp, 128)

    # Generation-aware sizing (v5e/v6e: 128 MiB VMEM -> bigger tiles; v7x: 64 MiB).
    try:
        vmem_cap = int(pltpu.get_tpu_info().vmem_capacity_bytes)
    except Exception:
        vmem_cap = 64 * 1024 * 1024
    big_vmem = vmem_cap >= 100 * 1024 * 1024
    row_target = 32 if big_vmem else 16
    budget = min((vmem_cap * 3) // 4, 100 * 1024 * 1024)

    Th = min(_round_up(row_target, g), _round_up(H, g))

    def vmem_estimate(th):
        hp = _round_up(H, th)
        lp = (hp + 2 * (rmax + 1)) * Wp
        thw = th * Wp
        return (2 * Cin_p * lp * isz                 # resident padded input (dbl-buf)
                + 2 * n_taps * Cout_p * Cin_p * isz  # tap weights (dbl-buf)
                + 2 * Cout_p * thw * osz             # output tile (dbl-buf)
                + Cout_p * thw * 4                   # f32 accumulator
                + 2 * Cin_p * thw * isz              # live tap windows
                + 2 * 1024 * 1024)                   # slack

    while Th > g and vmem_estimate(Th) > budget:
        Th -= g

    Hp = _round_up(H, Th)
    nt = Hp // Th
    Hpad = Hp + 2 * (rmax + 1)
    Lp = Hpad * Wp
    THW = Th * Wp
    vmem_limit = int(min(max(budget, (vmem_estimate(Th) * 5) // 4), vmem_cap))

    # Zero-pad: channels -> Cin_p; rows rmax+1 / (Hp-H)+rmax+1; cols rmax / Wp-W-rmax.
    xp = jnp.pad(x_nchw, ((0, 0), (0, Cin_p - Cin),
                          (rmax + 1, (Hp - H) + rmax + 1),
                          (rmax, Wp - W - rmax)))
    xp_flat = xp.reshape(N, Cin_p, Lp)               # free (contiguous) reshape

    # Per-tap weights (n_taps, Cout_p, Cin_p); tap order (rate, ky, kx).
    w_parts = []
    for w in weights:
        wpad = jnp.pad(w, ((0, Cout_p - Cout), (0, Cin_p - Cin), (0, 0), (0, 0)))
        w_parts.append(jnp.transpose(wpad, (2, 3, 0, 1)).reshape(9, Cout_p, Cin_p))
    w_stack = jnp.concatenate(w_parts, axis=0).astype(dt)

    # PyTorch sums the per-rate conv outputs (each with its bias) -> sum biases once.
    b_sum = sum(biases)
    b_col = jnp.pad(b_sum, (0, Cout_p - Cout)).reshape(Cout_p, 1).astype(jnp.float32)

    # Static flat tap offsets, one tuple per row tile.
    tile_offsets = tuple(
        tuple((t * Th + (ky - 1) * r + rmax + 1) * Wp + (kx - 1) * r
              for r in rates for ky in range(3) for kx in range(3))
        for t in range(nt))

    kernel = _make_kernel(tile_offsets, n_taps, Cout_p, THW)

    out_flat = pl.pallas_call(
        kernel,
        out_shape=jax.ShapeDtypeStruct((N, Cout_p, Hp * Wp), out_dtype),
        grid_spec=pltpu.PrefetchScalarGridSpec(
            num_scalar_prefetch=0,
            grid=(N, nt),
            in_specs=[
                # Full padded image per batch element; index_map ignores the
                # row-tile axis -> stays resident in VMEM, no halo re-fetch.
                pl.BlockSpec((1, Cin_p, Lp), lambda n, t: (n, 0, 0)),
                pl.BlockSpec((n_taps, Cout_p, Cin_p), lambda n, t: (0, 0, 0)),
                pl.BlockSpec((Cout_p, 1), lambda n, t: (0, 0)),
            ],
            out_specs=pl.BlockSpec((1, Cout_p, THW), lambda n, t: (n, 0, t)),
        ),
        compiler_params=pltpu.CompilerParams(
            dimension_semantics=("parallel", "parallel"),
            vmem_limit_bytes=vmem_limit,
        ),
    )(xp_flat, w_stack, b_col)

    # (N,Cout_p,Hp*Wp) -> (N,Cout_p,Hp,Wp) (free) -> crop pad channels/rows/cols.
    out = out_flat.reshape(N, Cout_p, Hp, Wp)
    return out[:, :Cout, :H, rmax:rmax + W]


def aspp_sum_reference(x_nchw, weights, biases, rates):
    """Pure-JAX reference: sum of lax dilated convs (matches nn.Conv2d semantics)."""
    out = None
    for w, b, r in zip(weights, biases, rates):
        y = lax.conv_general_dilated(
            x_nchw, w,
            window_strides=(1, 1),
            padding=[(r, r), (r, r)],
            rhs_dilation=(r, r),
            dimension_numbers=("NCHW", "OIHW", "NCHW"),
        ) + b[None, :, None, None]
        out = y if out is None else out + y
    return out


if __name__ == "__main__":
    # Small shapes consistent with the module: N=2, Cin=4, Cout=8, H=W=16.
    N, Cin, Cout, H, W = 2, 4, 8, 16, 16
    rates = (1, 2, 3)

    key = jax.random.PRNGKey(0)
    kx, *kws = jax.random.split(key, 1 + 2 * len(rates))
    x = jax.random.normal(kx, (N, Cin, H, W), dtype=jnp.float32)

    weights, biases = [], []
    for i, r in enumerate(rates):
        kw, kb = kws[2 * i], kws[2 * i + 1]
        # nn.Conv2d(c_in, c_out, 3): weight (Cout, Cin, 3, 3), bias (Cout,)
        weights.append(0.1 * jax.random.normal(kw, (Cout, Cin, 3, 3), jnp.float32))
        biases.append(0.1 * jax.random.normal(kb, (Cout,), jnp.float32))

    out = aspp_sum_pallas(x, weights, biases, rates)
    out = jax.block_until_ready(out)

    ref = aspp_sum_reference(x, weights, biases, rates)
    assert out.shape == (N, Cout, H, W), out.shape
    assert jnp.allclose(out, ref, atol=1e-4, rtol=1e-4), (
        float(jnp.max(jnp.abs(out - ref))))

    print("KERNEL_OK")
</pallas_src>

<mosaic_0001>
module attributes {stable_mosaic.version = 11 : i64} {
  func.func @kernel(%arg0: i32, %arg1: i32, %arg2: memref<1x8x576xf32, #tpu.memory_space<vmem>>, %arg3: memref<27x8x8xf32, #tpu.memory_space<vmem>>, %arg4: memref<8x1xf32, #tpu.memory_space<vmem>>, %arg5: memref<1x8x384xf32, #tpu.memory_space<vmem>>) attributes {dimension_semantics = [#tpu.dimension_semantics<parallel>, #tpu.dimension_semantics<parallel>], iteration_bounds = array<i64: 2, 1>, scalar_prefetch = 0 : i64, scratch_operands = 0 : i64, tpu.core_type = #tpu.core_type<tc>, window_params = [{transform_indices = @transform_0, window_bounds = array<i64: 1, 8, 576>}, {pipeline_mode = #tpu.pipeline_mode<synchronous>, transform_indices = @transform_1, window_bounds = array<i64: 27, 8, 8>}, {pipeline_mode = #tpu.pipeline_mode<synchronous>, transform_indices = @transform_2, window_bounds = array<i64: 8, 1>}, {transform_indices = @transform_3, window_bounds = array<i64: 1, 8, 384>}]} {
    %c0 = arith.constant 0 : index
    %c0_0 = arith.constant 0 : index
    %0 = vector.load %arg4[%c0, %c0_0] : memref<8x1xf32, #tpu.memory_space<vmem>>, vector<8x1xf32>
    %1 = vector.shape_cast %0 : vector<8x1xf32> to vector<8x1xf32>
    %2 = vector.broadcast %1 : vector<8x1xf32> to vector<8x384xf32>
    %c0_1 = arith.constant 0 : index
    %c0_2 = arith.constant 0 : index
    %c71 = arith.constant 71 : index
    %3 = vector.load %arg2[%c0_1, %c0_2, %c71] : memref<1x8x576xf32, #tpu.memory_space<vmem>>, vector<1x8x384xf32>
    %4 = vector.shape_cast %3 : vector<1x8x384xf32> to vector<8x384xf32>
    %c0_3 = arith.constant 0 : index
    %c0_4 = arith.constant 0 : index
    %c0_5 = arith.constant 0 : index
    %5 = vector.load %arg3[%c0_3, %c0_4, %c0_5] : memref<27x8x8xf32, #tpu.memory_space<vmem>>, vector<1x8x8xf32>
    %6 = vector.shape_cast %5 : vector<1x8x8xf32> to vector<8x8xf32>
    %cst = arith.constant dense<0.000000e+00> : vector<8x384xf32>
    %7 = tpu.matmul %6, %4, %cst {dimension_numbers = #tpu.dot_dimension_numbers<[1], [0], [0], [1], [0, 0, 1, 1], [], []>} : vector<8x8xf32>, vector<8x384xf32>, vector<8x384xf32> -> vector<8x384xf32>
    %8 = arith.addf %2, %7 : vector<8x384xf32>
    %c0_6 = arith.constant 0 : index
    %c0_7 = arith.constant 0 : index
    %c72 = arith.constant 72 : index
    %9 = vector.load %arg2[%c0_6, %c0_7, %c72] : memref<1x8x576xf32, #tpu.memory_space<vmem>>, vector<1x8x384xf32>
    %10 = vector.shape_cast %9 : vector<1x8x384xf32> to vector<8x384xf32>
    %c1 = arith.constant 1 : index
    %c0_8 = arith.constant 0 : index
    %c0_9 = arith.constant 0 : index
    %11 = vector.load %arg3[%c1, %c0_8, %c0_9] : memref<27x8x8xf32, #tpu.memory_space<vmem>>, vector<1x8x8xf32>
    %12 = vector.shape_cast %11 : vector<1x8x8xf32> to vector<8x8xf32>
    %cst_10 = arith.constant dense<0.000000e+00> : vector<8x384xf32>
    %13 = tpu.matmul %12, %10, %cst_10 {dimension_numbers = #tpu.dot_dimension_numbers<[1], [0], [0], [1], [0, 0, 1, 1], [], []>} : vector<8x8xf32>, vector<8x384xf32>, vector<8x384xf32> -> vector<8x384xf32>
    %14 = arith.addf %8, %13 : vector<8x384xf32>
    %c0_11 = arith.constant 0 : index
    %c0_12 = arith.constant 0 : index
    %c73 = arith.constant 73 : index
    %15 = vector.load %arg2[%c0_11, %c0_12, %c73] : memref<1x8x576xf32, #tpu.memory_space<vmem>>, vector<1x8x384xf32>
    %16 = vector.shape_cast %15 : vector<1x8x384xf32> to vector<8x384xf32>
    %c2 = arith.constant 2 : index
    %c0_13 = arith.constant 0 : index
    %c0_14 = arith.constant 0 : index
    %17 = vector.load %arg3[%c2, %c0_13, %c0_14] : memref<27x8x8xf32, #tpu.memory_space<vmem>>, vector<1x8x8xf32>
    %18 = vector.shape_cast %17 : vector<1x8x8xf32> to vector<8x8xf32>
    %cst_15 = arith.constant dense<0.000000e+00> : vector<8x384xf32>
    %19 = tpu.matmul %18, %16, %cst_15 {dimension_numbers = #tpu.dot_dimension_numbers<[1], [0], [0], [1], [0, 0, 1, 1], [], []>} : vector<8x8xf32>, vector<8x384xf32>, vector<8x384xf32> -> vector<8x384xf32>
    %20 = arith.addf %14, %19 : vector<8x384xf32>
    %c0_16 = arith.constant 0 : index
    %c0_17 = arith.constant 0 : index
    %c95 = arith.constant 95 : index
    %21 = vector.load %arg2[%c0_16, %c0_17, %c95] : memref<1x8x576xf32, #tpu.memory_space<vmem>>, vector<1x8x384xf32>
    %22 = vector.shape_cast %21 : vector<1x8x384xf32> to vector<8x384xf32>
    %c3 = arith.constant 3 : index
    %c0_18 = arith.constant 0 : index
    %c0_19 = arith.constant 0 : index
    %23 = vector.load %arg3[%c3, %c0_18, %c0_19] : memref<27x8x8xf32, #tpu.memory_space<vmem>>, vector<1x8x8xf32>
    %24 = vector.shape_cast %23 : vector<1x8x8xf32> to vector<8x8xf32>
    %cst_20 = arith.constant dense<0.000000e+00> : vector<8x384xf32>
    %25 = tpu.matmul %24, %22, %cst_20 {dimension_numbers = #tpu.dot_dimension_numbers<[1], [0], [0], [1], [0, 0, 1, 1], [], []>} : vector<8x8xf32>, vector<8x384xf32>, vector<8x384xf32> -> vector<8x384xf32>
    %26 = arith.addf %20, %25 : vector<8x384xf32>
    %c0_21 = arith.constant 0 : index
    %c0_22 = arith.constant 0 : index
    %c96 = arith.constant 96 : index
    %27 = vector.load %arg2[%c0_21, %c0_22, %c96] : memref<1x8x576xf32, #tpu.memory_space<vmem>>, vector<1x8x384xf32>
    %28 = vector.shape_cast %27 : vector<1x8x384xf32> to vector<8x384xf32>
    %c4 = arith.constant 4 : index
    %c0_23 = arith.constant 0 : index
    %c0_24 = arith.constant 0 : index
    %29 = vector.load %arg3[%c4, %c0_23, %c0_24] : memref<27x8x8xf32, #tpu.memory_space<vmem>>, vector<1x8x8xf32>
    %30 = vector.shape_cast %29 : vector<1x8x8xf32> to vector<8x8xf32>
    %cst_25 = arith.constant dense<0.000000e+00> : vector<8x384xf32>
    %31 = tpu.matmul %30, %28, %cst_25 {dimension_numbers = #tpu.dot_dimension_numbers<[1], [0], [0], [1], [0, 0, 1, 1], [], []>} : vector<8x8xf32>, vector<8x384xf32>, vector<8x384xf32> -> vector<8x384xf32>
    %32 = arith.addf %26, %31 : vector<8x384xf32>
    %c0_26 = arith.constant 0 : index
    %c0_27 = arith.constant 0 : index
    %c97 = arith.constant 97 : index
    %33 = vector.load %arg2[%c0_26, %c0_27, %c97] : memref<1x8x576xf32, #tpu.memory_space<vmem>>, vector<1x8x384xf32>
    %34 = vector.shape_cast %33 : vector<1x8x384xf32> to vector<8x384xf32>
    %c5 = arith.constant 5 : index
    %c0_28 = arith.constant 0 : index
    %c0_29 = arith.constant 0 : index
    %35 = vector.load %arg3[%c5, %c0_28, %c0_29] : memref<27x8x8xf32, #tpu.memory_space<vmem>>, vector<1x8x8xf32>
    %36 = vector.shape_cast %35 : vector<1x8x8xf32> to vector<8x8xf32>
    %cst_30 = arith.constant dense<0.000000e+00> : vector<8x384xf32>
    %37 = tpu.matmul %36, %34, %cst_30 {dimension_numbers = #tpu.dot_dimension_numbers<[1], [0], [0], [1], [0, 0, 1, 1], [], []>} : vector<8x8xf32>, vector<8x384xf32>, vector<8x384xf32> -> vector<8x384xf32>
    %38 = arith.addf %32, %37 : vector<8x384xf32>
    %c0_31 = arith.constant 0 : index
    %c0_32 = arith.constant 0 : index
    %c119 = arith.constant 119 : index
    %39 = vector.load %arg2[%c0_31, %c0_32, %c119] : memref<1x8x576xf32, #tpu.memory_space<vmem>>, vector<1x8x384xf32>
    %40 = vector.shape_cast %39 : vector<1x8x384xf32> to vector<8x384xf32>
    %c6 = arith.constant 6 : index
    %c0_33 = arith.constant 0 : index
    %c0_34 = arith.constant 0 : index
    %41 = vector.load %arg3[%c6, %c0_33, %c0_34] : memref<27x8x8xf32, #tpu.memory_space<vmem>>, vector<1x8x8xf32>
    %42 = vector.shape_cast %41 : vector<1x8x8xf32> to vector<8x8xf32>
    %cst_35 = arith.constant dense<0.000000e+00> : vector<8x384xf32>
    %43 = tpu.matmul %42, %40, %cst_35 {dimension_numbers = #tpu.dot_dimension_numbers<[1], [0], [0], [1], [0, 0, 1, 1], [], []>} : vector<8x8xf32>, vector<8x384xf32>, vector<8x384xf32> -> vector<8x384xf32>
    %44 = arith.addf %38, %43 : vector<8x384xf32>
    %c0_36 = arith.constant 0 : index
    %c0_37 = arith.constant 0 : index
    %c120 = arith.constant 120 : index
    %45 = vector.load %arg2[%c0_36, %c0_37, %c120] : memref<1x8x576xf32, #tpu.memory_space<vmem>>, vector<1x8x384xf32>
    %46 = vector.shape_cast %45 : vector<1x8x384xf32> to vector<8x384xf32>
    %c7 = arith.constant 7 : index
    %c0_38 = arith.constant 0 : index
    %c0_39 = arith.constant 0 : index
    %47 = vector.load %arg3[%c7, %c0_38, %c0_39] : memref<27x8x8xf32, #tpu.memory_space<vmem>>, vector<1x8x8xf32>
    %48 = vector.shape_cast %47 : vector<1x8x8xf32> to vector<8x8xf32>
    %cst_40 = arith.constant dense<0.000000e+00> : vector<8x384xf32>
    %49 = tpu.matmul %48, %46, %cst_40 {dimension_numbers = #tpu.dot_dimension_numbers<[1], [0], [0], [1], [0, 0, 1, 1], [], []>} : vector<8x8xf32>, vector<8x384xf32>, vector<8x384xf32> -> vector<8x384xf32>
    %50 = arith.addf %44, %49 : vector<8x384xf32>
    %c0_41 = arith.constant 0 : index
    %c0_42 = arith.constant 0 : index
    %c121 = arith.constant 121 : index
    %51 = vector.load %arg2[%c0_41, %c0_42, %c121] : memref<1x8x576xf32, #tpu.memory_space<vmem>>, vector<1x8x384xf32>
    %52 = vector.shape_cast %51 : vector<1x8x384xf32> to vector<8x384xf32>
    %c8 = arith.constant 8 : index
    %c0_43 = arith.constant 0 : index
    %c0_44 = arith.constant 0 : index
    %53 = vector.load %arg3[%c8, %c0_43, %c0_44] : memref<27x8x8xf32, #tpu.memory_space<vmem>>, vector<1x8x8xf32>
    %54 = vector.shape_cast %53 : vector<1x8x8xf32> to vector<8x8xf32>
    %cst_45 = arith.constant dense<0.000000e+00> : vector<8x384xf32>
    %55 = tpu.matmul %54, %52, %cst_45 {dimension_numbers = #tpu.dot_dimension_numbers<[1], [0], [0], [1], [0, 0, 1, 1], [], []>} : vector<8x8xf32>, vector<8x384xf32>, vector<8x384xf32> -> vector<8x384xf32>
    %56 = arith.addf %50, %55 : vector<8x384xf32>
    %c0_46 = arith.constant 0 : index
    %c0_47 = arith.constant 0 : index
    %c46 = arith.constant 46 : index
    %57 = vector.load %arg2[%c0_46, %c0_47, %c46] : memref<1x8x576xf32, #tpu.memory_space<vmem>>, vector<1x8x384xf32>
    %58 = vector.shape_cast %57 : vector<1x8x384xf32> to vector<8x384xf32>
    %c9 = arith.constant 9 : index
    %c0_48 = arith.constant 0 : index
    %c0_49 = arith.constant 0 : index
    %59 = vector.load %arg3[%c9, %c0_48, %c0_49] : memref<27x8x8xf32, #tpu.memory_space<vmem>>, vector<1x8x8xf32>
    %60 = vector.shape_cast %59 : vector<1x8x8xf32> to vector<8x8xf32>
    %cst_50 = arith.constant dense<0.000000e+00> : vector<8x384xf32>
    %61 = tpu.matmul %60, %58, %cst_50 {dimension_numbers = #tpu.dot_dimension_numbers<[1], [0], [0], [1], [0, 0, 1, 1], [], []>} : vector<8x8xf32>, vector<8x384xf32>, vector<8x384xf32> -> vector<8x384xf32>
    %62 = arith.addf %56, %61 : vector<8x384xf32>
    %c0_51 = arith.constant 0 : index
    %c0_52 = arith.constant 0 : index
    %c48 = arith.constant 48 : index
    %63 = vector.load %arg2[%c0_51, %c0_52, %c48] : memref<1x8x576xf32, #tpu.memory_space<vmem>>, vector<1x8x384xf32>
    %64 = vector.shape_cast %63 : vector<1x8x384xf32> to vector<8x384xf32>
    %c10 = arith.constant 10 : index
    %c0_53 = arith.constant 0 : index
    %c0_54 = arith.constant 0 : index
    %65 = vector.load %arg3[%c10, %c0_53, %c0_54] : memref<27x8x8xf32, #tpu.memory_space<vmem>>, vector<1x8x8xf32>
    %66 = vector.shape_cast %65 : vector<1x8x8xf32> to vector<8x8xf32>
    %cst_55 = arith.constant dense<0.000000e+00> : vector<8x384xf32>
    %67 = tpu.matmul %66, %64, %cst_55 {dimension_numbers = #tpu.dot_dimension_numbers<[1], [0], [0], [1], [0, 0, 1, 1], [], []>} : vector<8x8xf32>, vector<8x384xf32>, vector<8x384xf32> -> vector<8x384xf32>
    %68 = arith.addf %62, %67 : vector<8x384xf32>
    %c0_56 = arith.constant 0 : index
    %c0_57 = arith.constant 0 : index
    %c50 = arith.constant 50 : index
    %69 = vector.load %arg2[%c0_56, %c0_57, %c50] : memref<1x8x576xf32, #tpu.memory_space<vmem>>, vector<1x8x384xf32>
    %70 = vector.shape_cast %69 : vector<1x8x384xf32> to vector<8x384xf32>
    %c11 = arith.constant 11 : index
    %c0_58 = arith.constant 0 : index
    %c0_59 = arith.constant 0 : index
    %71 = vector.load %arg3[%c11, %c0_58, %c0_59] : memref<27x8x8xf32, #tpu.memory_space<vmem>>, vector<1x8x8xf32>
    %72 = vector.shape_cast %71 : vector<1x8x8xf32> to vector<8x8xf32>
    %cst_60 = arith.constant dense<0.000000e+00> : vector<8x384xf32>
    %73 = tpu.matmul %72, %70, %cst_60 {dimension_numbers = #tpu.dot_dimension_numbers<[1], [0], [0], [1], [0, 0, 1, 1], [], []>} : vector<8x8xf32>, vector<8x384xf32>, vector<8x384xf32> -> vector<8x384xf32>
    %74 = arith.addf %68, %73 : vector<8x384xf32>
    %c0_61 = arith.constant 0 : index
    %c0_62 = arith.constant 0 : index
    %c94 = arith.constant 94 : index
    %75 = vector.load %arg2[%c0_61, %c0_62, %c94] : memref<1x8x576xf32, #tpu.memory_space<vmem>>, vector<1x8x384xf32>
    %76 = vector.shape_cast %75 : vector<1x8x384xf32> to vector<8x384xf32>
    %c12 = arith.constant 12 : index
    %c0_63 = arith.constant 0 : index
    %c0_64 = arith.constant 0 : index
    %77 = vector.load %arg3[%c12, %c0_63, %c0_64] : memref<27x8x8xf32, #tpu.memory_space<vmem>>, vector<1x8x8xf32>
    %78 = vector.shape_cast %77 : vector<1x8x8xf32> to vector<8x8xf32>
    %cst_65 = arith.constant dense<0.000000e+00> : vector<8x384xf32>
    %79 = tpu.matmul %78, %76, %cst_65 {dimension_numbers = #tpu.dot_dimension_numbers<[1], [0], [0], [1], [0, 0, 1, 1], [], []>} : vector<8x8xf32>, vector<8x384xf32>, vector<8x384xf32> -> vector<8x384xf32>
    %80 = arith.addf %74, %79 : vector<8x384xf32>
    %c0_66 = arith.constant 0 : index
    %c0_67 = arith.constant 0 : index
    %c96_68 = arith.constant 96 : index
    %81 = vector.load %arg2[%c0_66, %c0_67, %c96_68] : memref<1x8x576xf32, #tpu.memory_space<vmem>>, vector<1x8x384xf32>
    %82 = vector.shape_cast %81 : vector<1x8x384xf32> to vector<8x384xf32>
    %c13 = arith.constant 13 : index
    %c0_69 = arith.constant 0 : index
    %c0_70 = arith.constant 0 : index
    %83 = vector.load %arg3[%c13, %c0_69, %c0_70] : memref<27x8x8xf32, #tpu.memory_space<vmem>>, vector<1x8x8xf32>
    %84 = vector.shape_cast %83 : vector<1x8x8xf32> to vector<8x8xf32>
    %cst_71 = arith.constant dense<0.000000e+00> : vector<8x384xf32>
    %85 = tpu.matmul %84, %82, %cst_71 {dimension_numbers = #tpu.dot_dimension_numbers<[1], [0], [0], [1], [0, 0, 1, 1], [], []>} : vector<8x8xf32>, vector<8x384xf32>, vector<8x384xf32> -> vector<8x384xf32>
    %86 = arith.addf %80, %85 : vector<8x384xf32>
    %c0_72 = arith.constant 0 : index
    %c0_73 = arith.constant 0 : index
    %c98 = arith.constant 98 : index
    %87 = vector.load %arg2[%c0_72, %c0_73, %c98] : memref<1x8x576xf32, #tpu.memory_space<vmem>>, vector<1x8x384xf32>
    %88 = vector.shape_cast %87 : vector<1x8x384xf32> to vector<8x384xf32>
    %c14 = arith.constant 14 : index
    %c0_74 = arith.constant 0 : index
    %c0_75 = arith.constant 0 : index
    %89 = vector.load %arg3[%c14, %c0_74, %c0_75] : memref<27x8x8xf32, #tpu.memory_space<vmem>>, vector<1x8x8xf32>
    %90 = vector.shape_cast %89 : vector<1x8x8xf32> to vector<8x8xf32>
    %cst_76 = arith.constant dense<0.000000e+00> : vector<8x384xf32>
    %91 = tpu.matmul %90, %88, %cst_76 {dimension_numbers = #tpu.dot_dimension_numbers<[1], [0], [0], [1], [0, 0, 1, 1], [], []>} : vector<8x8xf32>, vector<8x384xf32>, vector<8x384xf32> -> vector<8x384xf32>
    %92 = arith.addf %86, %91 : vector<8x384xf32>
    %c0_77 = arith.constant 0 : index
    %c0_78 = arith.constant 0 : index
    %c142 = arith.constant 142 : index
    %93 = vector.load %arg2[%c0_77, %c0_78, %c142] : memref<1x8x576xf32, #tpu.memory_space<vmem>>, vector<1x8x384xf32>
    %94 = vector.shape_cast %93 : vector<1x8x384xf32> to vector<8x384xf32>
    %c15 = arith.constant 15 : index
    %c0_79 = arith.constant 0 : index
    %c0_80 = arith.constant 0 : index
    %95 = vector.load %arg3[%c15, %c0_79, %c0_80] : memref<27x8x8xf32, #tpu.memory_space<vmem>>, vector<1x8x8xf32>
    %96 = vector.shape_cast %95 : vector<1x8x8xf32> to vector<8x8xf32>
    %cst_81 = arith.constant dense<0.000000e+00> : vector<8x384xf32>
    %97 = tpu.matmul %96, %94, %cst_81 {dimension_numbers = #tpu.dot_dimension_numbers<[1], [0], [0], [1], [0, 0, 1, 1], [], []>} : vector<8x8xf32>, vector<8x384xf32>, vector<8x384xf32> -> vector<8x384xf32>
    %98 = arith.addf %92, %97 : vector<8x384xf32>
    %c0_82 = arith.constant 0 : index
    %c0_83 = arith.constant 0 : index
    %c144 = arith.constant 144 : index
    %99 = vector.load %arg2[%c0_82, %c0_83, %c144] : memref<1x8x576xf32, #tpu.memory_space<vmem>>, vector<1x8x384xf32>
    %100 = vector.shape_cast %99 : vector<1x8x384xf32> to vector<8x384xf32>
    %c16 = arith.constant 16 : index
    %c0_84 = arith.constant 0 : index
    %c0_85 = arith.constant 0 : index
    %101 = vector.load %arg3[%c16, %c0_84, %c0_85] : memref<27x8x8xf32, #tpu.memory_space<vmem>>, vector<1x8x8xf32>
    %102 = vector.shape_cast %101 : vector<1x8x8xf32> to vector<8x8xf32>
    %cst_86 = arith.constant dense<0.000000e+00> : vector<8x384xf32>
    %103 = tpu.matmul %102, %100, %cst_86 {dimension_numbers = #tpu.dot_dimension_numbers<[1], [0], [0], [1], [0, 0, 1, 1], [], []>} : vector<8x8xf32>, vector<8x384xf32>, vector<8x384xf32> -> vector<8x384xf32>
    %104 = arith.addf %98, %103 : vector<8x384xf32>
    %c0_87 = arith.constant 0 : index
    %c0_88 = arith.constant 0 : index
    %c146 = arith.constant 146 : index
    %105 = vector.load %arg2[%c0_87, %c0_88, %c146] : memref<1x8x576xf32, #tpu.memory_space<vmem>>, vector<1x8x384xf32>
    %106 = vector.shape_cast %105 : vector<1x8x384xf32> to vector<8x384xf32>
    %c17 = arith.constant 17 : index
    %c0_89 = arith.constant 0 : index
    %c0_90 = arith.constant 0 : index
    %107 = vector.load %arg3[%c17, %c0_89, %c0_90] : memref<27x8x8xf32, #tpu.memory_space<vmem>>, vector<1x8x8xf32>
    %108 = vector.shape_cast %107 : vector<1x8x8xf32> to vector<8x8xf32>
    %cst_91 = arith.constant dense<0.000000e+00> : vector<8x384xf32>
    %109 = tpu.matmul %108, %106, %cst_91 {dimension_numbers = #tpu.dot_dimension_numbers<[1], [0], [0], [1], [0, 0, 1, 1], [], []>} : vector<8x8xf32>, vector<8x384xf32>, vector<8x384xf32> -> vector<8x384xf32>
    %110 = arith.addf %104, %109 : vector<8x384xf32>
    %c0_92 = arith.constant 0 : index
    %c0_93 = arith.constant 0 : index
    %c21 = arith.constant 21 : index
    %111 = vector.load %arg2[%c0_92, %c0_93, %c21] : memref<1x8x576xf32, #tpu.memory_space<vmem>>, vector<1x8x384xf32>
    %112 = vector.shape_cast %111 : vector<1x8x384xf32> to vector<8x384xf32>
    %c18 = arith.constant 18 : index
    %c0_94 = arith.constant 0 : index
    %c0_95 = arith.constant 0 : index
    %113 = vector.load %arg3[%c18, %c0_94, %c0_95] : memref<27x8x8xf32, #tpu.memory_space<vmem>>, vector<1x8x8xf32>
    %114 = vector.shape_cast %113 : vector<1x8x8xf32> to vector<8x8xf32>
    %cst_96 = arith.constant dense<0.000000e+00> : vector<8x384xf32>
    %115 = tpu.matmul %114, %112, %cst_96 {dimension_numbers = #tpu.dot_dimension_numbers<[1], [0], [0], [1], [0, 0, 1, 1], [], []>} : vector<8x8xf32>, vector<8x384xf32>, vector<8x384xf32> -> vector<8x384xf32>
    %116 = arith.addf %110, %115 : vector<8x384xf32>
    %c0_97 = arith.constant 0 : index
    %c0_98 = arith.constant 0 : index
    %c24 = arith.constant 24 : index
    %117 = vector.load %arg2[%c0_97, %c0_98, %c24] : memref<1x8x576xf32, #tpu.memory_space<vmem>>, vector<1x8x384xf32>
    %118 = vector.shape_cast %117 : vector<1x8x384xf32> to vector<8x384xf32>
    %c19 = arith.constant 19 : index
    %c0_99 = arith.constant 0 : index
    %c0_100 = arith.constant 0 : index
    %119 = vector.load %arg3[%c19, %c0_99, %c0_100] : memref<27x8x8xf32, #tpu.memory_space<vmem>>, vector<1x8x8xf32>
    %120 = vector.shape_cast %119 : vector<1x8x8xf32> to vector<8x8xf32>
    %cst_101 = arith.constant dense<0.000000e+00> : vector<8x384xf32>
    %121 = tpu.matmul %120, %118, %cst_101 {dimension_numbers = #tpu.dot_dimension_numbers<[1], [0], [0], [1], [0, 0, 1, 1], [], []>} : vector<8x8xf32>, vector<8x384xf32>, vector<8x384xf32> -> vector<8x384xf32>
    %122 = arith.addf %116, %121 : vector<8x384xf32>
    %c0_102 = arith.constant 0 : index
    %c0_103 = arith.constant 0 : index
    %c27 = arith.constant 27 : index
    %123 = vector.load %arg2[%c0_102, %c0_103, %c27] : memref<1x8x576xf32, #tpu.memory_space<vmem>>, vector<1x8x384xf32>
    %124 = vector.shape_cast %123 : vector<1x8x384xf32> to vector<8x384xf32>
    %c20 = arith.constant 20 : index
    %c0_104 = arith.constant 0 : index
    %c0_105 = arith.constant 0 : index
    %125 = vector.load %arg3[%c20, %c0_104, %c0_105] : memref<27x8x8xf32, #tpu.memory_space<vmem>>, vector<1x8x8xf32>
    %126 = vector.shape_cast %125 : vector<1x8x8xf32> to vector<8x8xf32>
    %cst_106 = arith.constant dense<0.000000e+00> : vector<8x384xf32>
    %127 = tpu.matmul %126, %124, %cst_106 {dimension_numbers = #tpu.dot_dimension_numbers<[1], [0], [0], [1], [0, 0, 1, 1], [], []>} : vector<8x8xf32>, vector<8x384xf32>, vector<8x384xf32> -> vector<8x384xf32>
    %128 = arith.addf %122, %127 : vector<8x384xf32>
    %c0_107 = arith.constant 0 : index
    %c0_108 = arith.constant 0 : index
    %c93 = arith.constant 93 : index
    %129 = vector.load %arg2[%c0_107, %c0_108, %c93] : memref<1x8x576xf32, #tpu.memory_space<vmem>>, vector<1x8x384xf32>
    %130 = vector.shape_cast %129 : vector<1x8x384xf32> to vector<8x384xf32>
    %c21_109 = arith.constant 21 : index
    %c0_110 = arith.constant 0 : index
    %c0_111 = arith.constant 0 : index
    %131 = vector.load %arg3[%c21_109, %c0_110, %c0_111] : memref<27x8x8xf32, #tpu.memory_space<vmem>>, vector<1x8x8xf32>
    %132 = vector.shape_cast %131 : vector<1x8x8xf32> to vector<8x8xf32>
    %cst_112 = arith.constant dense<0.000000e+00> : vector<8x384xf32>
    %133 = tpu.matmul %132, %130, %cst_112 {dimension_numbers = #tpu.dot_dimension_numbers<[1], [0], [0], [1], [0, 0, 1, 1], [], []>} : vector<8x8xf32>, vector<8x384xf32>, vector<8x384xf32> -> vector<8x384xf32>
    %134 = arith.addf %128, %133 : vector<8x384xf32>
    %c0_113 = arith.constant 0 : index
    %c0_114 = arith.constant 0 : index
    %c96_115 = arith.constant 96 : index
    %135 = vector.load %arg2[%c0_113, %c0_114, %c96_115] : memref<1x8x576xf32, #tpu.memory_space<vmem>>, vector<1x8x384xf32>
    %136 = vector.shape_cast %135 : vector<1x8x384xf32> to vector<8x384xf32>
    %c22 = arith.constant 22 : index
    %c0_116 = arith.constant 0 : index
    %c0_117 = arith.constant 0 : index
    %137 = vector.load %arg3[%c22, %c0_116, %c0_117] : memref<27x8x8xf32, #tpu.memory_space<vmem>>, vector<1x8x8xf32>
    %138 = vector.shape_cast %137 : vector<1x8x8xf32> to vector<8x8xf32>
    %cst_118 = arith.constant dense<0.000000e+00> : vector<8x384xf32>
    %139 = tpu.matmul %138, %136, %cst_118 {dimension_numbers = #tpu.dot_dimension_numbers<[1], [0], [0], [1], [0, 0, 1, 1], [], []>} : vector<8x8xf32>, vector<8x384xf32>, vector<8x384xf32> -> vector<8x384xf32>
    %140 = arith.addf %134, %139 : vector<8x384xf32>
    %c0_119 = arith.constant 0 : index
    %c0_120 = arith.constant 0 : index
    %c99 = arith.constant 99 : index
    %141 = vector.load %arg2[%c0_119, %c0_120, %c99] : memref<1x8x576xf32, #tpu.memory_space<vmem>>, vector<1x8x384xf32>
    %142 = vector.shape_cast %141 : vector<1x8x384xf32> to vector<8x384xf32>
    %c23 = arith.constant 23 : index
    %c0_121 = arith.constant 0 : index
    %c0_122 = arith.constant 0 : index
    %143 = vector.load %arg3[%c23, %c0_121, %c0_122] : memref<27x8x8xf32, #tpu.memory_space<vmem>>, vector<1x8x8xf32>
    %144 = vector.shape_cast %143 : vector<1x8x8xf32> to vector<8x8xf32>
    %cst_123 = arith.constant dense<0.000000e+00> : vector<8x384xf32>
    %145 = tpu.matmul %144, %142, %cst_123 {dimension_numbers = #tpu.dot_dimension_numbers<[1], [0], [0], [1], [0, 0, 1, 1], [], []>} : vector<8x8xf32>, vector<8x384xf32>, vector<8x384xf32> -> vector<8x384xf32>
    %146 = arith.addf %140, %145 : vector<8x384xf32>
    %c0_124 = arith.constant 0 : index
    %c0_125 = arith.constant 0 : index
    %c165 = arith.constant 165 : index
    %147 = vector.load %arg2[%c0_124, %c0_125, %c165] : memref<1x8x576xf32, #tpu.memory_space<vmem>>, vector<1x8x384xf32>
    %148 = vector.shape_cast %147 : vector<1x8x384xf32> to vector<8x384xf32>
    %c24_126 = arith.constant 24 : index
    %c0_127 = arith.constant 0 : index
    %c0_128 = arith.constant 0 : index
    %149 = vector.load %arg3[%c24_126, %c0_127, %c0_128] : memref<27x8x8xf32, #tpu.memory_space<vmem>>, vector<1x8x8xf32>
    %150 = vector.shape_cast %149 : vector<1x8x8xf32> to vector<8x8xf32>
    %cst_129 = arith.constant dense<0.000000e+00> : vector<8x384xf32>
    %151 = tpu.matmul %150, %148, %cst_129 {dimension_numbers = #tpu.dot_dimension_numbers<[1], [0], [0], [1], [0, 0, 1, 1], [], []>} : vector<8x8xf32>, vector<8x384xf32>, vector<8x384xf32> -> vector<8x384xf32>
    %152 = arith.addf %146, %151 : vector<8x384xf32>
    %c0_130 = arith.constant 0 : index
    %c0_131 = arith.constant 0 : index
    %c168 = arith.constant 168 : index
    %153 = vector.load %arg2[%c0_130, %c0_131, %c168] : memref<1x8x576xf32, #tpu.memory_space<vmem>>, vector<1x8x384xf32>
    %154 = vector.shape_cast %153 : vector<1x8x384xf32> to vector<8x384xf32>
    %c25 = arith.constant 25 : index
    %c0_132 = arith.constant 0 : index
    %c0_133 = arith.constant 0 : index
    %155 = vector.load %arg3[%c25, %c0_132, %c0_133] : memref<27x8x8xf32, #tpu.memory_space<vmem>>, vector<1x8x8xf32>
    %156 = vector.shape_cast %155 : vector<1x8x8xf32> to vector<8x8xf32>
    %cst_134 = arith.constant dense<0.000000e+00> : vector<8x384xf32>
    %157 = tpu.matmul %156, %154, %cst_134 {dimension_numbers = #tpu.dot_dimension_numbers<[1], [0], [0], [1], [0, 0, 1, 1], [], []>} : vector<8x8xf32>, vector<8x384xf32>, vector<8x384xf32> -> vector<8x384xf32>
    %158 = arith.addf %152, %157 : vector<8x384xf32>
    %c0_135 = arith.constant 0 : index
    %c0_136 = arith.constant 0 : index
    %c171 = arith.constant 171 : index
    %159 = vector.load %arg2[%c0_135, %c0_136, %c171] : memref<1x8x576xf32, #tpu.memory_space<vmem>>, vector<1x8x384xf32>
    %160 = vector.shape_cast %159 : vector<1x8x384xf32> to vector<8x384xf32>
    %c26 = arith.constant 26 : index
    %c0_137 = arith.constant 0 : index
    %c0_138 = arith.constant 0 : index
    %161 = vector.load %arg3[%c26, %c0_137, %c0_138] : memref<27x8x8xf32, #tpu.memory_space<vmem>>, vector<1x8x8xf32>
    %162 = vector.shape_cast %161 : vector<1x8x8xf32> to vector<8x8xf32>
    %cst_139 = arith.constant dense<0.000000e+00> : vector<8x384xf32>
    %163 = tpu.matmul %162, %160, %cst_139 {dimension_numbers = #tpu.dot_dimension_numbers<[1], [0], [0], [1], [0, 0, 1, 1], [], []>} : vector<8x8xf32>, vector<8x384xf32>, vector<8x384xf32> -> vector<8x384xf32>
    %164 = arith.addf %158, %163 : vector<8x384xf32>
    %c0_140 = arith.constant 0 : index
    %c0_141 = arith.constant 0 : index
    %c0_142 = arith.constant 0 : index
    %165 = vector.load %arg5[%c0_140, %c0_141, %c0_142] : memref<1x8x384xf32, #tpu.memory_space<vmem>>, vector<1x8x384xf32>
    %166 = vector.shape_cast %165 : vector<1x8x384xf32> to vector<8x384xf32>
    %167 = vector.shape_cast %164 : vector<8x384xf32> to vector<1x8x384xf32>
    tpu.vector_store %arg5[%c0_140, %c0_141, %c0_142], %167 {strides = array<i32>} : memref<1x8x384xf32, #tpu.memory_space<vmem>>, vector<1x8x384xf32>,
    return
  }
  func.func @transform_0(%arg0: i32, %arg1: i32) -> (i32, i32, i32) {
    %c0_i32 = arith.constant 0 : i32
    %c0_i32_0 = arith.constant 0 : i32
    %c0_i32_1 = arith.constant 0 : i32
    return %arg0, %c0_i32, %c0_i32_0 : i32, i32, i32
  }
  func.func @transform_1(%arg0: i32, %arg1: i32) -> (i32, i32, i32) {
    %c0_i32 = arith.constant 0 : i32
    %c0_i32_0 = arith.constant 0 : i32
    %c0_i32_1 = arith.constant 0 : i32
    %c0_i32_2 = arith.constant 0 : i32
    return %c0_i32, %c0_i32_0, %c0_i32_1 : i32, i32, i32
  }
  func.func @transform_2(%arg0: i32, %arg1: i32) -> (i32, i32) {
    %c0_i32 = arith.constant 0 : i32
    %c0_i32_0 = arith.constant 0 : i32
    %c0_i32_1 = arith.constant 0 : i32
    return %c0_i32, %c0_i32_0 : i32, i32
  }
  func.func @transform_3(%arg0: i32, %arg1: i32) -> (i32, i32, i32) {
    %c0_i32 = arith.constant 0 : i32
    %c0_i32_0 = arith.constant 0 : i32
    return %arg0, %c0_i32, %arg1 : i32, i32, i32
  }
}

</mosaic_0001>

<bundles_post_ra>
// kernel: tpu_custom_call.1
= control target key start
LH: loop header
LB: loop body
LE: loop exit
PB: predicated region body
PF: predicated region fallthrough
CT: control target
= control target key end

     0   :  { %8 = vsyncpa [#allocation3], 0  ;;  %s5835_s0 = inlined_call_operand.vmem [shape: f32[2,8,576], index: 0, kind: input, shape index: {}]   ;;  %s5836_s1 = inlined_call_operand.vmem [shape: f32[27,8,8], index: 1, kind: input, shape index: {}]   ;;  %s5837_s2 = inlined_call_operand.vmem [shape: f32[8,1], index: 2, kind: input, shape index: {}]   ;;  %s5838_s3 = inlined_call_operand.hbm [shape: f32[2,8,384], index: 3, kind: output, shape index: {}]  }
   0x1   :  { %10 = vsyncpa [#allocation3 + $0x1], 0  ;;  %s5294_s12 = smov 0   ;;  %s5296_s13 = smov 0  }
   0x2   :  { %s5298_s14 = smov 0   ;;  %s5300_s15 = smov 0  }
   0x3   :  { %s5302_s16 = smov 0   ;;  %s5304_s17 = smov 0  }
   0x4 LB: > { %s4693_s18 = sadd.s32 4294967295, %s5243_s17   ;;  %s4694_s19 = sadd.s32 4294967294, %s5243_s17   ;;  %s5243_s17 = sphi %s5304_s17, %s16_s17   ;;  %s5239_s16 = sphi %s5302_s16, %s5845_s16   ;;  %s5235_s15 = sphi %s5300_s15, %s5844_s15   ;;  %s5231_s14 = sphi %s5298_s14, %s5843_s14   ;;  %s5227_s13 = sphi %s5296_s13, %s5842_s13   ;;  %s5223_s12 = sphi %s5294_s12, %s5841_s12  }
   0x5   : > { %s28_s20 = sadd.s32 1, %s5239_s16  ;;  %s105_s21 = sadd.s32 1, %s5231_s14 }
   0x6   : > { %p30_p0 = scmp.ge.s32.totalorder %s28_s20, 2  ;;  %p115_p1 = scmp.ne.s32.totalorder %s5231_s14, %s5227_s13 }
   0x7   : > { %p116_p2 = scmp.eq.s32.totalorder %s4693_s18, 1  ;;  %p121_p3 = scmp.ne.s32.totalorder %s5227_s13, %s5223_s12 }
   0x8   : > { %s5847_s20 = smov (%p30_p0, %s28_s20), 0  ;;  %p122_p5 = scmp.eq.s32.totalorder %s4694_s19, 1 }
   0x9   : > { %p5334_p4 = por %p116_p2, %p115_p1  ;;  %s100_s23 = ssub.s32 %s5239_s16, %s5847_s20 }
   0xa   : > { %p4697_p6 = scmp.ge.s32.totalorder %s5243_s17, 1  ;;  %p103_p7 = scmp.eq.s32.totalorder %s100_s23, 0 }
   0xb   : > { %p5341_p8 = por %p122_p5, %p121_p3  ;;  %p154_p9 = scmp.lt.s32.totalorder %s5243_s17, 3 }
   0xc   : > { %s5347_s25 = scalar_select %p103_p7, %s5231_s14, %s105_s21  }
   0xd   : > { %p155_p10 = pnand %p4697_p6, %p154_p9 }
   0xe   : > { %p178_p11 = scmp.lt.s32.totalorder (!%p155_p10), %s5235_s15, 1  ;;  %v5245_v0 = vmov (!%p155_p10), 0.0   ;;  %vm5246_vm0 = vmmov (!%p155_p10), 0   ;;  %s5247_s4 = smov (!%p155_p10), 57   ;;  %vm207_vm1 = vcmask (!%p155_p10), 465920   ;;  %v194_v10 = vld [vmem:[%s5836_s1] sm:$0xff] (!%p155_p10) }
   0xf   : > { %158 = sbr.rel (%p155_p10) target bundleno = 587 (0x24b), region = 32  ;;  %4836 = vmatprep.subr.mxu1 (!%p155_p10), %v5245_v0  ;;  %4838 = vmatprep.mubr.msk.f32.mxu1 (!%p155_p10), %vm5246_vm0, %v5245_v0  ;;  %s5248_s5 = smov (!%p155_p10), 56   ;;  %vm214_vm2 = vcmask (!%p155_p10), 64512   ;;  %vm372_vm3 = vcmask (!%p155_p10), 457728   ;;  %v4701_v19 = vld [vmem:[%s5836_s1 + $0x8] sm:$0xff] (!%p155_p10)  ;;  %vm536_vm4 = vcmask (!%p155_p10), 449536  }
  0x10   : > { %282 = vmatprep.mubr.f32.mxu0 (!%p155_p10), %v5245_v0  ;;  %s5249_s6 = smov (!%p155_p10), 55   ;;  %s5250_s7 = smov (!%p155_p10), 33   ;;  %v4704_v27 = vld [vmem:[%s5836_s1 + $0x10] sm:$0xff] (!%p155_p10)  ;;  %vm700_vm5 = vcmask (!%p155_p10), 269312   ;;  %v4707_v35 = vld [vmem:[%s5836_s1 + $0x18] sm:$0xff] (!%p155_p10)  ;;  %vm864_vm6 = vcmask (!%p155_p10), 261120  }
  0x11   : > { %s5251_s8 = smov (!%p155_p10), 32   ;;  %s5252_s9 = smov (!%p155_p10), 31   ;;  %v4710_v43 = vld [vmem:[%s5836_s1 + $0x20] sm:$0xff] (!%p155_p10)  ;;  %vm1028_vm7 = vcmask (!%p155_p10), 252928   ;;  %v4713_v51 = vld [vmem:[%s5836_s1 + $0x28] sm:$0xff] (!%p155_p10)  ;;  %vm1192_vm8 = vcmask (!%p155_p10), 72704  }
  0x12   : > { %s5253_s10 = smov (!%p155_p10), 9   ;;  %s5254_s11 = smov (!%p155_p10), 8   ;;  %v4716_v59 = vld [vmem:[%s5836_s1 + $0x30] sm:$0xff] (!%p155_p10)  ;;  %vm1519_vm9 = vcmask (!%p155_p10), 56320   ;;  %vm1683_vm10 = vcmask (!%p155_p10), 670720   ;;  %vm1847_vm11 = vcmask (!%p155_p10), 654336  }
  0x13   : > { %s5255_s18 = smov (!%p155_p10), 7   ;;  %s5256_s19 = smov (!%p155_p10), 82   ;;  %vm2011_vm12 = vcmask (!%p155_p10), 637952   ;;  %vm2175_vm13 = vcmask (!%p155_p10), 277504   ;;  %vm2488_vm14 = vcmask (!%p155_p10), 244736   ;;  %vm2660_vm15 = vcmask (!%p155_p10), 932864  }
  0x14   : > { %s5257_s21 = smov (!%p155_p10), 80   ;;  %s5258_s23 = smov (!%p155_p10), 78  }
  0x15   : > { %s5261_s28 = smov (!%p155_p10), 114   ;;  %s5267_s29 = smov (!%p155_p10), 35  }
  0x16   : > { %s179_s26 = scalar_select %p178_p11, %s5235_s15, 1 }
  0x18   : > { %s5079_s27 = smul.u32 40, %s179_s26  ;;  %s5259_s26 = smov 34  }
  0x1a   : > { %s5358_s30 = scalar_lea.vmem %s5835_s0, %s5079_s27  ;;  %s5260_s27 = smov 30  }
  0x1b   : > { %v5361_v1 = vld [vmem:[%s5358_s30 + $0x8] sm:$0xff]  ;;  %v5364_v2 = vld [vmem:[%s5358_s30] sm:$0xff]  ;;  %v5369_v3 = vld [vmem:[%s5358_s30 + $0x10] sm:$0xff] }
  0x1c   : > { %201 = vrot.lane.b32.xlu0 %v5361_v1, %s5247_s4  ;;  %199 = vrot.lane.b32.xlu1 %v5364_v2, %s5247_s4  ;;  %v5372_v4 = vld [vmem:[%s5358_s30 + $0x18] sm:$0xff]  ;;  %v5431_v5 = vld [vmem:[%s5358_s30 + $0x20] sm:$0xff]  ;;  %s5262_s30 = smov 112  }
  0x20   : > { %203 = vrot.lane.b32.xlu0 %v5369_v3, %s5247_s4  ;;  %205 = vrot.lane.b32.xlu1 %v5372_v4, %s5247_s4 }
  0x24   : > { %366 = vrot.lane.b32.xlu0 %v5361_v1, %s5248_s5  ;;  %368 = vrot.lane.b32.xlu1 %v5369_v3, %s5248_s5 }
  0x28   : > { %364 = vrot.lane.b32.xlu0 %v5364_v2, %s5248_s5  ;;  %370 = vrot.lane.b32.xlu1 %v5372_v4, %s5248_s5  ;;  %s5268_s5 = smov 29  }
  0x2c   : > { %530 = vrot.lane.b32.xlu0 %v5361_v1, %s5249_s6  ;;  %532 = vrot.lane.b32.xlu1 %v5369_v3, %s5249_s6 }
  0x30   : > { %528 = vrot.lane.b32.xlu0 %v5364_v2, %s5249_s6  ;;  %534 = vrot.lane.b32.xlu1 %v5372_v4, %s5249_s6 }
  0x34   : > { %694 = vrot.lane.b32.xlu0 %v5361_v1, %s5250_s7  ;;  %696 = vrot.lane.b32.xlu1 %v5369_v3, %s5250_s7 }
  0x38   : > { %692 = vrot.lane.b32.xlu0 %v5364_v2, %s5250_s7  ;;  %698 = vrot.lane.b32.xlu1 %v5372_v4, %s5250_s7  ;;  %s5263_s7 = smov 110  }
  0x3c   : > { %858 = vrot.lane.b32.xlu0 %v5361_v1, %s5251_s8  ;;  %860 = vrot.lane.b32.xlu1 %v5369_v3, %s5251_s8 }
  0x40   : > { %856 = vrot.lane.b32.xlu0 %v5364_v2, %s5251_s8  ;;  %862 = vrot.lane.b32.xlu1 %v5372_v4, %s5251_s8  ;;  %s5269_s8 = smov 91  }
  0x44   : > { %1022 = vrot.lane.b32.xlu0 %v5361_v1, %s5252_s9  ;;  %1024 = vrot.lane.b32.xlu1 %v5369_v3, %s5252_s9 }
  0x48   : > { %1020 = vrot.lane.b32.xlu0 %v5364_v2, %s5252_s9  ;;  %1026 = vrot.lane.b32.xlu1 %v5372_v4, %s5252_s9  ;;  %s5273_s9 = smov [#allocation2]  }
  0x4c   : > { %1186 = vrot.lane.b32.xlu0 %v5361_v1, %s5253_s10  ;;  %1188 = vrot.lane.b32.xlu1 %v5369_v3, %s5253_s10 }
  0x50   : > { %1184 = vrot.lane.b32.xlu0 %v5364_v2, %s5253_s10  ;;  %1190 = vrot.lane.b32.xlu1 %v5372_v4, %s5253_s10  ;;  %s5264_s10 = smov 107  }
  0x54   : > { %1350 = vrot.lane.b32.xlu0 %v5361_v1, %s5254_s11  ;;  %1352 = vrot.lane.b32.xlu1 %v5369_v3, %s5254_s11 }
  0x58   : > { %1348 = vrot.lane.b32.xlu0 %v5364_v2, %s5254_s11  ;;  %1354 = vrot.lane.b32.xlu1 %v5372_v4, %s5254_s11 }
  0x5c   : > { %1513 = vrot.lane.b32.xlu0 %v5361_v1, %s5255_s18  ;;  %1515 = vrot.lane.b32.xlu1 %v5369_v3, %s5255_s18 }
  0x60   : > { %1511 = vrot.lane.b32.xlu0 %v5364_v2, %s5255_s18  ;;  %1517 = vrot.lane.b32.xlu1 %v5372_v4, %s5255_s18 }
  0x64   : > { %1677 = vrot.lane.b32.xlu0 %v5361_v1, %s5256_s19  ;;  %1679 = vrot.lane.b32.xlu1 %v5369_v3, %s5256_s19 }
  0x68   : > { %1675 = vrot.lane.b32.xlu0 %v5364_v2, %s5256_s19  ;;  %1681 = vrot.lane.b32.xlu1 %v5372_v4, %s5256_s19  ;;  %s5265_s19 = smov 104  }
  0x6c   : > { %1841 = vrot.lane.b32.xlu0 %v5361_v1, %s5257_s21  ;;  %1843 = vrot.lane.b32.xlu1 %v5369_v3, %s5257_s21 }
  0x70   : > { %1839 = vrot.lane.b32.xlu0 %v5364_v2, %s5257_s21  ;;  %1845 = vrot.lane.b32.xlu1 %v5372_v4, %s5257_s21 }
  0x74   : > { %2005 = vrot.lane.b32.xlu0 %v5361_v1, %s5258_s23  ;;  %2007 = vrot.lane.b32.xlu1 %v5369_v3, %s5258_s23 }
  0x78   : > { %2003 = vrot.lane.b32.xlu0 %v5364_v2, %s5258_s23  ;;  %2009 = vrot.lane.b32.xlu1 %v5372_v4, %s5258_s23 }
  0x7c   : > { %2169 = vrot.lane.b32.xlu0 %v5361_v1, %s5259_s26  ;;  %2171 = vrot.lane.b32.xlu1 %v5369_v3, %s5259_s26 }
  0x80   : > { %2167 = vrot.lane.b32.xlu0 %v5364_v2, %s5259_s26  ;;  %2173 = vrot.lane.b32.xlu1 %v5372_v4, %s5259_s26  ;;  %s5266_s26 = smov 101  }
  0x84   : > { %2482 = vrot.lane.b32.xlu0 %v5361_v1, %s5260_s27  ;;  %2484 = vrot.lane.b32.xlu1 %v5369_v3, %s5260_s27 }
  0x88   : > { %2480 = vrot.lane.b32.xlu0 %v5364_v2, %s5260_s27  ;;  %2486 = vrot.lane.b32.xlu1 %v5372_v4, %s5260_s27  ;;  %s175_s27 = sand.u32 1, %s5227_s13  }
  0x8c   : > { %2654 = vrot.lane.b32.xlu0 %v5369_v3, %s5261_s28  ;;  %2656 = vrot.lane.b32.xlu1 %v5372_v4, %s5261_s28 }
  0x8e   : > { %v202_v6 = vpop.permute.xlu0 %201  ;;  %v200_v7 = vpop.permute.xlu1 %199 }
  0x8f   : > { %v208_v13 = vsel %vm207_vm1, %v200_v7, %v202_v6 }
  0x90   : > { %2652 = vrot.lane.b32.xlu0 %v5361_v1, %s5261_s28  ;;  %2658 = vrot.lane.b32.xlu1 %v5431_v5, %s5261_s28  ;;  %s5078_s28 = smul.u32 24, %s175_s27 }
  0x92   : > { %v204_v8 = vpop.permute.xlu0 %203  ;;  %v206_v9 = vpop.permute.xlu1 %205  ;;  %s177_s4 = scalar_lea.vmem [#allocation2], %s5078_s28 }
  0x93   : > { %v209_v11 = vsel %vm207_vm1, %v202_v6, %v204_v8  ;;  %v210_v12 = vsel %vm207_vm1, %v204_v8, %v206_v9  ;;  %v4719_v9 = vld [vmem:[%s5836_s1 + $0x38] sm:$0xff]  ;;  %vm2824_vm1 = vcmask 916480  }
  0x94   : > { %218 = vmatprep.subr.mxu0 %v209_v11  ;;  %4837 = vmatpush3.msra.mxu1 %v210_v12 }
  0x95   : > { %219 = vmatpush1.msra.mxu0 %v208_v13  ;;  %4839 = vmatmul.mubr.msk.f32.vlgmr.msra.gmra.mrb[0].mxu1 %vm214_vm2, %v194_v10 }
  0x96   : > { %v367_v14 = vpop.permute.xlu0 %366  ;;  %2818 = vrot.lane.b32.xlu0 %v5369_v3, %s5262_s30  ;;  %4699 = vmatmul.mubr.msk.f32.vlgmr.msra.gmra.mrb[0].mxu0 %vm214_vm2, %v194_v10  ;;  %v369_v15 = vpop.permute.xlu1 %368 }
  0x97   : > { %v374_v16 = vsel %vm372_vm3, %v367_v14, %v369_v15  ;;  %2820 = vrot.lane.b32.xlu1 %v5372_v4, %s5262_s30  ;;  %4841 = vmatprep.subr.mxu1 %v5245_v0 }
  0x98   : > { %382 = vmatprep.subr.mxu0 %v374_v16  ;;  %4843 = vmatprep.mubr.msk.f32.mxu1 %vm5246_vm0, %v5245_v0  ;;  %v4722_v16 = vld [vmem:[%s5836_s1 + $0x40] sm:$0xff] }
  0x99   : > { %446 = vmatprep.mubr.f32.mxu0 %v5245_v0 }
  0x9a   : > { %2816 = vrot.lane.b32.xlu0 %v5361_v1, %s5262_s30  ;;  %v365_v17 = vpop.permute.xlu0 %364  ;;  %v371_v18 = vpop.permute.xlu1 %370 }
  0x9b   : > { %v373_v20 = vsel %vm372_vm3, %v365_v17, %v367_v14  ;;  %v375_v21 = vsel %vm372_vm3, %v369_v15, %v371_v18  ;;  %2822 = vrot.lane.b32.xlu1 %v5431_v5, %s5262_s30  ;;  %vm2988_vm3 = vcmask 900096   ;;  %s4623_s30 = sshll.u32 %s177_s4, 4  ;;  %s5790_s30 = int_to_ptr.vmem [resolvable:$true] %s4623_s30 }
  0x9c   : > { %383 = vmatpush1.msra.mxu0 %v373_v20  ;;  %4842 = vmatpush3.msra.mxu1 %v375_v21 }
  0x9d   : > { %4844 = vmatmul.mubr.msk.f32.vlgmr.msra.gmra.mrb[0].mxu1 %vm214_vm2, %v4701_v19  ;;  %4846 = vmatprep.subr.mxu1 %v5245_v0 }
  0x9e   : > { %2982 = vrot.lane.b32.xlu0 %v5369_v3, %s5263_s7  ;;  %v531_v22 = vpop.permute.xlu0 %530  ;;  %4702 = vmatmul.mubr.msk.f32.vlgmr.msra.gmra.mrb[0].mxu0 %vm214_vm2, %v4701_v19  ;;  %v533_v23 = vpop.permute.xlu1 %532 }
  0x9f   : > { %v538_v24 = vsel %vm536_vm4, %v531_v22, %v533_v23  ;;  %2984 = vrot.lane.b32.xlu1 %v5372_v4, %s5263_s7  ;;  %4848 = vmatprep.mubr.msk.f32.mxu1 %vm5246_vm0, %v5245_v0 }
  0xa0   : > { %546 = vmatprep.subr.mxu0 %v538_v24  ;;  %610 = vmatprep.mubr.f32.mxu0 %v5245_v0  ;;  %v4725_v24 = vld [vmem:[%s5836_s1 + $0x48] sm:$0xff] }
  0xa2   : > { %2980 = vrot.lane.b32.xlu0 %v5361_v1, %s5263_s7  ;;  %v529_v25 = vpop.permute.xlu0 %528  ;;  %v535_v26 = vpop.permute.xlu1 %534 }
  0xa3   : > { %v537_v28 = vsel %vm536_vm4, %v529_v25, %v531_v22  ;;  %v539_v29 = vsel %vm536_vm4, %v533_v23, %v535_v26  ;;  %2986 = vrot.lane.b32.xlu1 %v5431_v5, %s5263_s7  ;;  %vm3152_vm4 = vcmask 875520  }
  0xa4   : > { %547 = vmatpush1.msra.mxu0 %v537_v28  ;;  %4847 = vmatpush3.msra.mxu1 %v539_v29 }
  0xa5   : > { %4849 = vmatmul.mubr.msk.f32.vlgmr.msra.gmra.mrb[0].mxu1 %vm214_vm2, %v4704_v27  ;;  %4851 = vmatprep.subr.mxu1 %v5245_v0 }
  0xa6   : > { %3146 = vrot.lane.b32.xlu0 %v5361_v1, %s5264_s10  ;;  %v695_v30 = vpop.permute.xlu0 %694  ;;  %4705 = vmatmul.mubr.msk.f32.vlgmr.msra.gmra.mrb[0].mxu0 %vm214_vm2, %v4704_v27  ;;  %v697_v31 = vpop.permute.xlu1 %696 }
  0xa7   : > { %v702_v32 = vsel %vm700_vm5, %v695_v30, %v697_v31  ;;  %3148 = vrot.lane.b32.xlu1 %v5369_v3, %s5264_s10  ;;  %4853 = vmatprep.mubr.msk.f32.mxu1 %vm5246_vm0, %v5245_v0 }
  0xa8   : > { %710 = vmatprep.subr.mxu0 %v702_v32  ;;  %774 = vmatprep.mubr.f32.mxu0 %v5245_v0  ;;  %v4728_v32 = vld [vmem:[%s5836_s1 + $0x50] sm:$0xff] }
  0xaa   : > { %3144 = vrot.lane.b32.xlu0 %v5364_v2, %s5264_s10  ;;  %v693_v33 = vpop.permute.xlu0 %692  ;;  %v699_v34 = vpop.permute.xlu1 %698 }
  0xab   : > { %v701_v36 = vsel %vm700_vm5, %v693_v33, %v695_v30  ;;  %v703_v37 = vsel %vm700_vm5, %v697_v31, %v699_v34  ;;  %3150 = vrot.lane.b32.xlu1 %v5372_v4, %s5264_s10  ;;  %vm3316_vm5 = vcmask 850944   ;;  %s5169_s10 = sshll.u32 %s5273_s9, 4  ;;  %s5170_s10 = int_to_ptr.vmem [resolvable:$false] %s5169_s10 }
  0xac   : > { %711 = vmatpush1.msra.mxu0 %v701_v36  ;;  %4852 = vmatpush3.msra.mxu1 %v703_v37  ;;  %v5272_v37 = vmov 0   ;;  %s5171_s11 = scalar_lea.vmem %s5170_s10, 768  ;;  %p5172_p1 = scmp.lt.s32.totalorder %s5790_s30, %s5170_s10 }
  0xad   : > { %4854 = vmatmul.mubr.msk.f32.vlgmr.msra.gmra.mrb[0].mxu1 %vm214_vm2, %v4707_v35  ;;  %4856 = vmatprep.subr.mxu1 %v5245_v0 }
  0xae   : > { %3310 = vrot.lane.b32.xlu0 %v5361_v1, %s5265_s19  ;;  %v859_v38 = vpop.permute.xlu0 %858  ;;  %4708 = vmatmul.mubr.msk.f32.vlgmr.msra.gmra.mrb[0].mxu0 %vm214_vm2, %v4707_v35  ;;  %v861_v39 = vpop.permute.xlu1 %860 }
  0xaf   : > { %v5491_v40 = vsel %vm864_vm6, %v859_v38, %v861_v39  ;;  %3312 = vrot.lane.b32.xlu1 %v5369_v3, %s5265_s19  ;;  %4858 = vmatprep.mubr.msk.f32.mxu1 %vm5246_vm0, %v5245_v0 }
  0xb0   : > { %874 = vmatprep.subr.mxu0 %v5491_v40  ;;  %938 = vmatprep.mubr.f32.mxu0 %v5245_v0 }
  0xb1   : > { %5164 = vset.pattern.permute.xlu0 %v5272_v37 }
  0xb2   : > { %3308 = vrot.lane.b32.xlu0 %v5364_v2, %s5265_s19  ;;  %v857_v41 = vpop.permute.xlu0 %856  ;;  %v863_v42 = vpop.permute.xlu1 %862 }
  0xb3   : > { %v5503_v44 = vsel %vm864_vm6, %v857_v41, %v859_v38  ;;  %v5506_v45 = vsel %vm864_vm6, %v861_v39, %v863_v42  ;;  %3314 = vrot.lane.b32.xlu1 %v5372_v4, %s5265_s19  ;;  %s5270_s19 = smov 88   ;;  %vm3480_vm6 = vcmask 826368  }
  0xb4   : > { %875 = vmatpush1.msra.mxu0 %v5503_v44  ;;  %4857 = vmatpush3.msra.mxu1 %v5506_v45 }
  0xb5   : > { %4859 = vmatmul.mubr.msk.f32.vlgmr.msra.gmra.mrb[0].mxu1 %vm214_vm2, %v4710_v43  ;;  %4861 = vmatprep.subr.mxu1 %v5245_v0 }
  0xb6   : > { %3474 = vrot.lane.b32.xlu0 %v5361_v1, %s5266_s26  ;;  %v1023_v46 = vpop.permute.xlu0 %1022  ;;  %4711 = vmatmul.mubr.msk.f32.vlgmr.msra.gmra.mrb[0].mxu0 %vm214_vm2, %v4710_v43  ;;  %v1025_v47 = vpop.permute.xlu1 %1024 }
  0xb7   : > { %v1030_v48 = vsel %vm1028_vm7, %v1023_v46, %v1025_v47  ;;  %3476 = vrot.lane.b32.xlu1 %v5369_v3, %s5266_s26  ;;  %4863 = vmatprep.mubr.msk.f32.mxu1 %vm5246_vm0, %v5245_v0 }
  0xb8   : > { %1038 = vmatprep.subr.mxu0 %v1030_v48  ;;  %1102 = vmatprep.mubr.f32.mxu0 %v5245_v0 }
  0xba   : > { %3472 = vrot.lane.b32.xlu0 %v5364_v2, %s5266_s26  ;;  %v1021_v49 = vpop.permute.xlu0 %1020  ;;  %v1027_v50 = vpop.permute.xlu1 %1026 }
  0xbb   : > { %v1029_v52 = vsel %vm1028_vm7, %v1021_v49, %v1023_v46  ;;  %v1031_v53 = vsel %vm1028_vm7, %v1025_v47, %v1027_v50  ;;  %3478 = vrot.lane.b32.xlu1 %v5372_v4, %s5266_s26  ;;  %s5271_s26 = smov 85   ;;  %v4734_v49 = vld [vmem:[%s5836_s1 + $0x60] sm:$0xff]  ;;  %vm3644_vm7 = vcmask 285696  }
  0xbc   : > { %1039 = vmatpush1.msra.mxu0 %v1029_v52  ;;  %4862 = vmatpush3.msra.mxu1 %v1031_v53 }
  0xbd   : > { %4864 = vmatmul.mubr.msk.f32.vlgmr.msra.gmra.mrb[0].mxu1 %vm214_vm2, %v4713_v51  ;;  %4866 = vmatprep.subr.mxu1 %v5245_v0 }
  0xbe   : > { %3638 = vrot.lane.b32.xlu0 %v5361_v1, %s5267_s29  ;;  %v1187_v54 = vpop.permute.xlu0 %1186  ;;  %4714 = vmatmul.mubr.msk.f32.vlgmr.msra.gmra.mrb[0].mxu0 %vm214_vm2, %v4713_v51  ;;  %v1189_v55 = vpop.permute.xlu1 %1188 }
  0xbf   : > { %v1194_v56 = vsel %vm1192_vm8, %v1187_v54, %v1189_v55  ;;  %3640 = vrot.lane.b32.xlu1 %v5369_v3, %s5267_s29  ;;  %4868 = vmatprep.mubr.msk.f32.mxu1 %vm5246_vm0, %v5245_v0 }
  0xc0   : > { %1202 = vmatprep.subr.mxu0 %v1194_v56  ;;  %1266 = vmatprep.mubr.f32.mxu0 %v5245_v0  ;;  %v4737_v56 = vld [vmem:[%s5836_s1 + $0x68] sm:$0xff] }
  0xc2   : > { %3636 = vrot.lane.b32.xlu0 %v5364_v2, %s5267_s29  ;;  %v1185_v57 = vpop.permute.xlu0 %1184  ;;  %v1191_v58 = vpop.permute.xlu1 %1190 }
  0xc3   : > { %v1193_v60 = vsel %vm1192_vm8, %v1185_v57, %v1187_v54  ;;  %v1195_v61 = vsel %vm1192_vm8, %v1189_v55, %v1191_v58  ;;  %3642 = vrot.lane.b32.xlu1 %v5372_v4, %s5267_s29  ;;  %vm3957_vm8 = vcmask 236544   ;;  %s5080_s29 = smul.u32 384, %s5235_s15  ;;  %s4607_s15 = scalar_lea.sflag [#allocation3], %s175_s27 }
  0xc4   : > { %1203 = vmatpush1.msra.mxu0 %v1193_v60  ;;  %4867 = vmatpush3.msra.mxu1 %v1195_v61 }
  0xc5   : > { %4869 = vmatmul.mubr.msk.f32.vlgmr.msra.gmra.mrb[0].mxu1 %vm214_vm2, %v4716_v59  ;;  %4871 = vmatprep.subr.mxu1 %v5245_v0  ;;  %s5788_s7 = scalar_lea.hbm %s5838_s3, %s5080_s29 }
  0xc6   : > { %v1351_v62 = vpop.permute.xlu0 %1350  ;;  %4717 = vmatmul.mubr.msk.f32.vlgmr.msra.gmra.mrb[0].mxu0 %vm214_vm2, %v4716_v59  ;;  %v1353_v63 = vpop.permute.xlu1 %1352  ;;  %4873 = vmatprep.mubr.msk.f32.mxu1 %vm5246_vm0, %v5245_v0 }
  0xc7   : > { %v1357_v6 = vsel %vm214_vm2, %v1351_v62, %v1353_v63  ;;  %1429 = vmatprep.mubr.f32.mxu0 %v5245_v0  ;;  %3951 = vrot.lane.b32.xlu0 %v5361_v1, %s5268_s5 }
  0xc8   : > { %1365 = vmatprep.subr.mxu0 %v1357_v6  ;;  %3953 = vrot.lane.b32.xlu1 %v5369_v3, %s5268_s5  ;;  %v4740_v6 = vld [vmem:[%s5836_s1 + $0x70] sm:$0xff] }
  0xca   : > { %v1349_v7 = vpop.permute.xlu0 %1348  ;;  %v1355_v8 = vpop.permute.xlu1 %1354 }
  0xcb   : > { %v1356_v10 = vsel %vm214_vm2, %v1349_v7, %v1351_v62  ;;  %v1358_v11 = vsel %vm214_vm2, %v1353_v63, %v1355_v8  ;;  %3949 = vrot.lane.b32.xlu0 %v5364_v2, %s5268_s5 }
  0xcc   : > { %1366 = vmatpush1.msra.mxu0 %v1356_v10  ;;  %4872 = vmatpush3.msra.mxu1 %v1358_v11 }
  0xcd   : > { %4874 = vmatmul.mubr.msk.f32.vlgmr.msra.gmra.mrb[0].mxu1 %vm214_vm2, %v4719_v9  ;;  %4876 = vmatprep.subr.mxu1 %v5245_v0 }
  0xce   : > { %v1514_v12 = vpop.permute.xlu0 %1513  ;;  %4720 = vmatmul.mubr.msk.f32.vlgmr.msra.gmra.mrb[0].mxu0 %vm214_vm2, %v4719_v9  ;;  %v1516_v13 = vpop.permute.xlu1 %1515  ;;  %4878 = vmatprep.mubr.msk.f32.mxu1 %vm5246_vm0, %v5245_v0 }
  0xcf   : > { %v1521_v14 = vsel %vm1519_vm9, %v1514_v12, %v1516_v13  ;;  %3955 = vrot.lane.b32.xlu1 %v5372_v4, %s5268_s5  ;;  %1593 = vmatprep.mubr.f32.mxu0 %v5245_v0 }
  0xd0   : > { %1529 = vmatprep.subr.mxu0 %v1521_v14  ;;  %4115 = vrot.lane.b32.xlu0 %v5369_v3, %s5269_s8 }
  0xd2   : > { %v1512_v2 = vpop.permute.xlu0 %1511  ;;  %v1518_v15 = vpop.permute.xlu1 %1517 }
  0xd3   : > { %v1520_v17 = vsel %vm1519_vm9, %v1512_v2, %v1514_v12  ;;  %v1522_v18 = vsel %vm1519_vm9, %v1516_v13, %v1518_v15  ;;  %4117 = vrot.lane.b32.xlu1 %v5372_v4, %s5269_s8  ;;  %v4743_v12 = vld [vmem:[%s5836_s1 + $0x78] sm:$0xff]  ;;  %vm4121_vm9 = vcmask 744448  }
  0xd4   : > { %1530 = vmatpush1.msra.mxu0 %v1520_v17  ;;  %4877 = vmatpush3.msra.mxu1 %v1522_v18 }
  0xd5   : > { %4879 = vmatmul.mubr.msk.f32.vlgmr.msra.gmra.mrb[0].mxu1 %vm214_vm2, %v4722_v16  ;;  %4881 = vmatprep.subr.mxu1 %v5245_v0 }
  0xd6   : > { %v1678_v19 = vpop.permute.xlu0 %1677  ;;  %4723 = vmatmul.mubr.msk.f32.vlgmr.msra.gmra.mrb[0].mxu0 %vm214_vm2, %v4722_v16  ;;  %v1680_v20 = vpop.permute.xlu1 %1679  ;;  %4113 = vrot.lane.b32.xlu0 %v5361_v1, %s5269_s8 }
  0xd7   : > { %v1685_v21 = vsel %vm1683_vm10, %v1678_v19, %v1680_v20  ;;  %4883 = vmatprep.mubr.msk.f32.mxu1 %vm5246_vm0, %v5245_v0  ;;  %4119 = vrot.lane.b32.xlu1 %v5431_v5, %s5269_s8  ;;  %s5165_s8 = scalar_lea.vmem %s5790_s30, 384 }
  0xd8   : > { %1693 = vmatprep.subr.mxu0 %v1685_v21  ;;  %1757 = vmatprep.mubr.f32.mxu0 %v5245_v0  ;;  %p5166_p12 = scmp.ne.s32.totalorder %s5790_s30, %s5165_s8  ;;  %p5173_p2 = scmp.lt.s32.totalorder %s5171_s11, %s5165_s8 }
  0xda   : > { %v1676_v22 = vpop.permute.xlu0 %1675  ;;  %v1682_v23 = vpop.permute.xlu1 %1681  ;;  %4279 = vrot.lane.b32.xlu0 %v5369_v3, %s5270_s19  ;;  %p5167_p13 = pnand %p5166_p12, %p5334_p4  ;;  %p5174_p3 = por %p5173_p2, %p5172_p1 }
  0xdb   : > { %v1684_v25 = vsel %vm1683_vm10, %v1676_v22, %v1678_v19  ;;  %v1686_v26 = vsel %vm1683_vm10, %v1680_v20, %v1682_v23  ;;  %4281 = vrot.lane.b32.xlu1 %v5372_v4, %s5270_s19  ;;  %v4746_v19 = vld [vmem:[%s5836_s1 + $0x80] sm:$0xff]  ;;  %vm4285_vm10 = vcmask 719872  }
  0xdc   : > { %1694 = vmatpush1.msra.mxu0 %v1684_v25  ;;  %4882 = vmatpush3.msra.mxu1 %v1686_v26  ;;  %p5168_p0 = pneg %p5167_p13 }
  0xdd   : > { %4884 = vmatmul.mubr.msk.f32.vlgmr.msra.gmra.mrb[0].mxu1 %vm214_vm2, %v4725_v24  ;;  %4886 = vmatprep.subr.mxu1 %v5245_v0 }
  0xde   : > { %v1842_v27 = vpop.permute.xlu0 %1841  ;;  %4726 = vmatmul.mubr.msk.f32.vlgmr.msra.gmra.mrb[0].mxu0 %vm214_vm2, %v4725_v24  ;;  %v1844_v28 = vpop.permute.xlu1 %1843  ;;  %4277 = vrot.lane.b32.xlu0 %v5361_v1, %s5270_s19  ;;  %p5175_p5 = pnand %p5174_p3, %p5168_p0 }
  0xdf   : > { %v1849_v29 = vsel %vm1847_vm11, %v1842_v27, %v1844_v28  ;;  %4888 = vmatprep.mubr.msk.f32.mxu1 %vm5246_vm0, %v5245_v0  ;;  %4283 = vrot.lane.b32.xlu1 %v5431_v5, %s5270_s19 }
  0xe0   : > { %1857 = vmatprep.subr.mxu0 %v1849_v29  ;;  %1921 = vmatprep.mubr.f32.mxu0 %v5245_v0 }
  0xe2   : > { %v1840_v30 = vpop.permute.xlu0 %1839  ;;  %v1846_v31 = vpop.permute.xlu1 %1845  ;;  %4443 = vrot.lane.b32.xlu0 %v5369_v3, %s5271_s26 }
  0xe3   : > { %v1848_v33 = vsel %vm1847_vm11, %v1840_v30, %v1842_v27  ;;  %v1850_v34 = vsel %vm1847_vm11, %v1844_v28, %v1846_v31  ;;  %4445 = vrot.lane.b32.xlu1 %v5372_v4, %s5271_s26  ;;  %v184_v4 = vld [vmem:[%s5837_s2] sm:$0xff]  ;;  %v4749_v27 = vld [vmem:[%s5836_s1 + $0x88] sm:$0xff]  ;;  %vm4449_vm11 = vcmask 695296  }
  0xe4   : > { %1858 = vmatpush1.msra.mxu0 %v1848_v33  ;;  %4887 = vmatpush3.msra.mxu1 %v1850_v34 }
  0xe5   : > { %4889 = vmatmul.mubr.msk.f32.vlgmr.msra.gmra.mrb[0].mxu1 %vm214_vm2, %v4728_v32  ;;  %4891 = vmatprep.subr.mxu1 %v5245_v0 }
  0xe6   : > { %v2006_v35 = vpop.permute.xlu0 %2005  ;;  %4729 = vmatmul.mubr.msk.f32.vlgmr.msra.gmra.mrb[0].mxu0 %vm214_vm2, %v4728_v32  ;;  %v2008_v36 = vpop.permute.xlu1 %2007  ;;  %4441 = vrot.lane.b32.xlu0 %v5361_v1, %s5271_s26  ;;  %v4731_v1 = vld [vmem:[%s5836_s1 + $0x58] sm:$0xff] }
  0xe7   : > { %v2013_v3 = vsel %vm2011_vm12, %v2006_v35, %v2008_v36  ;;  %4893 = vmatprep.mubr.msk.f32.mxu1 %vm5246_vm0, %v5245_v0  ;;  %4447 = vrot.lane.b32.xlu1 %v5431_v5, %s5271_s26 }
  0xe8   : > { %2021 = vmatprep.subr.mxu0 %v2013_v3  ;;  %2085 = vmatprep.mubr.f32.mxu0 %v5245_v0 }
  0xea   : > { %v2004_v38 = vpop.permute.xlu0 %2003  ;;  %v2010_v39 = vpop.permute.xlu1 %2009  ;;  %187 = vperm.xlu0 %5164, %v184_v4  }
  0xeb   : > { %v2012_v41 = vsel %vm2011_vm12, %v2004_v38, %v2006_v35  ;;  %v2014_v5 = vsel %vm2011_vm12, %v2008_v36, %v2010_v39  ;;  %v4752_v35 = vld [vmem:[%s5836_s1 + $0x90] sm:$0xff] }
  0xec   : > { %2022 = vmatpush1.msra.mxu0 %v2012_v41  ;;  %4892 = vmatpush3.msra.mxu1 %v2014_v5  ;;  %v4755_v41 = vld [vmem:[%s5836_s1 + $0x98] sm:$0xff] }
  0xed   : > { %4894 = vmatmul.mubr.msk.f32.vlgmr.msra.gmra.mrb[0].mxu1 %vm214_vm2, %v4731_v1  ;;  %4896 = vmatprep.subr.mxu1 %v5245_v0 }
  0xee   : > { %v2170_v42 = vpop.permute.xlu0 %2169  ;;  %4732 = vmatmul.mubr.msk.f32.vlgmr.msra.gmra.mrb[0].mxu0 %vm214_vm2, %v4731_v1  ;;  %v2172_v43 = vpop.permute.xlu1 %2171  ;;  %4898 = vmatprep.mubr.msk.f32.mxu1 %vm5246_vm0, %v5245_v0 }
  0xef   : > { %v2177_v46 = vsel %vm2175_vm13, %v2170_v42, %v2172_v43  ;;  %2249 = vmatprep.mubr.f32.mxu0 %v5245_v0 }
  0xf0   : > { %2185 = vmatprep.subr.mxu0 %v2177_v46 }
  0xf2   : > { %v2168_v47 = vpop.permute.xlu0 %2167  ;;  %v2174_v48 = vpop.permute.xlu1 %2173 }
  0xf3   : > { %v2176_v50 = vsel %vm2175_vm13, %v2168_v47, %v2170_v42  ;;  %v2178_v51 = vsel %vm2175_vm13, %v2172_v43, %v2174_v48 }
  0xf4   : > { %2186 = vmatpush1.msra.mxu0 %v2176_v50  ;;  %4897 = vmatpush3.msra.mxu1 %v2178_v51  ;;  %v4758_v50 = vld [vmem:[%s5836_s1 + $0xa0] sm:$0xff] }
  0xf5   : > { %4899 = vmatmul.mubr.msk.f32.vlgmr.msra.gmra.mrb[0].mxu1 %vm214_vm2, %v4734_v49  ;;  %2334 = vmatprep.subr.mxu0 %v5491_v40 }
  0xf6   : > { %4901 = vmatprep.subr.mxu1 %v5245_v0  ;;  %4735 = vmatmul.mubr.msk.f32.vlgmr.msra.gmra.mrb[0].mxu0 %vm214_vm2, %v4734_v49  ;;  %v2483_v52 = vpop.permute.xlu0 %2482  ;;  %v2485_v53 = vpop.permute.xlu1 %2484 }
  0xf7   : > { %2335 = vmatpush1.msra.mxu0 %v5503_v44  ;;  %4902 = vmatpush3.msra.mxu1 %v5506_v45  ;;  %v2490_v54 = vsel %vm2488_vm14, %v2483_v52, %v2485_v53 }
  0xf8   : > { %4903 = vmatprep.mubr.msk.f32.mxu1 %vm5246_vm0, %v5245_v0  ;;  %2398 = vmatprep.mubr.f32.mxu0 %v5245_v0 }
  0xf9   : > { %2498 = vmatprep.subr.mxu0 %v2490_v54  ;;  %4906 = vmatprep.subr.mxu1 %v5245_v0 }
  0xfa   : > { %v2481_v55 = vpop.permute.xlu0 %2480  ;;  %v2487_v57 = vpop.permute.xlu1 %2486 }
  0xfb   : > { %v2491_v58 = vsel %vm2488_vm14, %v2485_v53, %v2487_v57  ;;  %v2489_v59 = vsel %vm2488_vm14, %v2481_v55, %v2483_v52  ;;  %v4761_v57 = vld [vmem:[%s5836_s1 + $0xa8] sm:$0xff] }
  0xfd   : > { %4904 = vmatmul.mubr.msk.f32.vlgmr.msra.gmra.mrb[0].mxu1 %vm214_vm2, %v4737_v56 }
  0xfe   : > { %4738 = vmatmul.mubr.msk.f32.vlgmr.msra.gmra.mrb[0].mxu0 %vm214_vm2, %v4737_v56  ;;  %v2655_v60 = vpop.permute.xlu0 %2654  ;;  %4907 = vmatpush3.msra.mxu1 %v2491_v58  ;;  %v2657_v61 = vpop.permute.xlu1 %2656 }
  0xff   : > { %2499 = vmatpush1.msra.mxu0 %v2489_v59  ;;  %4908 = vmatprep.mubr.msk.f32.mxu1 %vm5246_vm0, %v5245_v0  ;;  %v2662_v62 = vsel %vm2660_vm15, %v2655_v60, %v2657_v61 }
 0x100   : > { %2562 = vmatprep.mubr.f32.mxu0 %v5245_v0  ;;  %2670 = vmatprep.subr.mxu0 %v2662_v62 }
 0x101   : > { %4911 = vmatprep.subr.mxu1 %v5245_v0 }
 0x102   : > { %v2653_v63 = vpop.permute.xlu0 %2652  ;;  %v2659_v7 = vpop.permute.xlu1 %2658 }
 0x103   : > { %v2663_v8 = vsel %vm2660_vm15, %v2657_v61, %v2659_v7  ;;  %v2661_v9 = vsel %vm2660_vm15, %v2653_v63, %v2655_v60  ;;  %v4764_v61 = vld [vmem:[%s5836_s1 + $0xb0] sm:$0xff] }
 0x105   : > { %4909 = vmatmul.mubr.msk.f32.vlgmr.msra.gmra.mrb[0].mxu1 %vm214_vm2, %v4740_v6 }
 0x106   : > { %4741 = vmatmul.mubr.msk.f32.vlgmr.msra.gmra.mrb[0].mxu0 %vm214_vm2, %v4740_v6  ;;  %4912 = vmatpush3.msra.mxu1 %v2663_v8 }
 0x107   : > { %2671 = vmatpush1.msra.mxu0 %v2661_v9  ;;  %4913 = vmatprep.mubr.msk.f32.mxu1 %vm5246_vm0, %v5245_v0  ;;  %v4767_v9 = vld [vmem:[%s5836_s1 + $0xb8] sm:$0xff] }
 0x108   : > { %v2819_v10 = vpop.permute.xlu0 %2818  ;;  %2734 = vmatprep.mubr.f32.mxu0 %v5245_v0  ;;  %4916 = vmatprep.subr.mxu1 %v5245_v0 }
 0x109   : > { %v2821_v11 = vpop.permute.xlu1 %2820 }
 0x10a   : > { %v2826_v13 = vsel %vm2824_vm1, %v2819_v10, %v2821_v11 }
 0x10b   : > { %2834 = vmatprep.subr.mxu0 %v2826_v13 }
 0x10c   : > { %v2817_v14 = vpop.permute.xlu0 %2816 }
 0x10d   : > { %v2825_v2 = vsel %vm2824_vm1, %v2817_v14, %v2819_v10  ;;  %4914 = vmatmul.mubr.msk.f32.vlgmr.msra.gmra.mrb[0].mxu1 %vm214_vm2, %v4743_v12  ;;  %v2823_v15 = vpop.permute.xlu1 %2822 }
 0x10e   : > { %4744 = vmatmul.mubr.msk.f32.vlgmr.msra.gmra.mrb[0].mxu0 %vm214_vm2, %v4743_v12  ;;  %v2827_v16 = vsel %vm2824_vm1, %v2821_v11, %v2823_v15  ;;  %4918 = vmatprep.mubr.msk.f32.mxu1 %vm5246_vm0, %v5245_v0 }
 0x10f   : > { %2835 = vmatpush1.msra.mxu0 %v2825_v2  ;;  %4917 = vmatpush3.msra.mxu1 %v2827_v16  ;;  %v4770_v16 = vld [vmem:[%s5836_s1 + $0xc0] sm:$0xff] }
 0x110   : > { %v2983_v17 = vpop.permute.xlu0 %2982  ;;  %2898 = vmatprep.mubr.f32.mxu0 %v5245_v0  ;;  %4921 = vmatprep.subr.mxu1 %v5245_v0 }
 0x111   : > { %v2985_v18 = vpop.permute.xlu1 %2984 }
 0x112   : > { %v2990_v20 = vsel %vm2988_vm3, %v2983_v17, %v2985_v18 }
 0x113   : > { %2998 = vmatprep.subr.mxu0 %v2990_v20 }
 0x114   : > { %v2981_v21 = vpop.permute.xlu0 %2980 }
 0x115   : > { %v2989_v22 = vsel %vm2988_vm3, %v2981_v21, %v2983_v17  ;;  %4919 = vmatmul.mubr.msk.f32.vlgmr.msra.gmra.mrb[0].mxu1 %vm214_vm2, %v4746_v19  ;;  %v2987_v23 = vpop.permute.xlu1 %2986 }
 0x116   : > { %4747 = vmatmul.mubr.msk.f32.vlgmr.msra.gmra.mrb[0].mxu0 %vm214_vm2, %v4746_v19  ;;  %v2991_v24 = vsel %vm2988_vm3, %v2985_v18, %v2987_v23  ;;  %4923 = vmatprep.mubr.msk.f32.mxu1 %vm5246_vm0, %v5245_v0 }
 0x117   : > { %2999 = vmatpush1.msra.mxu0 %v2989_v22  ;;  %4922 = vmatpush3.msra.mxu1 %v2991_v24  ;;  %v4773_v24 = vld [vmem:[%s5836_s1 + $0xc8] sm:$0xff] }
 0x118   : > { %v3147_v25 = vpop.permute.xlu0 %3146  ;;  %3062 = vmatprep.mubr.f32.mxu0 %v5245_v0  ;;  %4926 = vmatprep.subr.mxu1 %v5245_v0 }
 0x119   : > { %v3149_v26 = vpop.permute.xlu1 %3148 }
 0x11a   : > { %v3154_v28 = vsel %vm3152_vm4, %v3147_v25, %v3149_v26 }
 0x11b   : > { %3162 = vmatprep.subr.mxu0 %v3154_v28 }
 0x11c   : > { %v3145_v29 = vpop.permute.xlu0 %3144 }
 0x11d   : > { %v3153_v30 = vsel %vm3152_vm4, %v3145_v29, %v3147_v25  ;;  %4924 = vmatmul.mubr.msk.f32.vlgmr.msra.gmra.mrb[0].mxu1 %vm214_vm2, %v4749_v27  ;;  %v3151_v31 = vpop.permute.xlu1 %3150 }
 0x11e   : > { %4750 = vmatmul.mubr.msk.f32.vlgmr.msra.gmra.mrb[0].mxu0 %vm214_vm2, %v4749_v27  ;;  %v3155_v32 = vsel %vm3152_vm4, %v3149_v26, %v3151_v31  ;;  %4928 = vmatprep.mubr.msk.f32.mxu1 %vm5246_vm0, %v5245_v0  ;;  %v4776_v27 = vld [vmem:[%s5836_s1 + $0xd0] sm:$0xff] }
 0x11f   : > { %3163 = vmatpush1.msra.mxu0 %v3153_v30  ;;  %4927 = vmatpush3.msra.mxu1 %v3155_v32 }
 0x120   : > { %v3311_v33 = vpop.permute.xlu0 %3310  ;;  %3226 = vmatprep.mubr.f32.mxu0 %v5245_v0  ;;  %4931 = vmatprep.subr.mxu1 %v5245_v0 }
 0x121   : > { %v3313_v34 = vpop.permute.xlu1 %3312 }
 0x122   : > { %v3318_v36 = vsel %vm3316_vm5, %v3311_v33, %v3313_v34 }
 0x123   : > { %3326 = vmatprep.subr.mxu0 %v3318_v36 }
 0x124   : > { %v3309_v3 = vpop.permute.xlu0 %3308 }
 0x125   : > { %v3317_v4 = vsel %vm3316_vm5, %v3309_v3, %v3311_v33  ;;  %4929 = vmatmul.mubr.msk.f32.vlgmr.msra.gmra.mrb[0].mxu1 %vm214_vm2, %v4752_v35  ;;  %v3315_v37 = vpop.permute.xlu1 %3314 }
 0x126   : > { %4753 = vmatmul.mubr.msk.f32.vlgmr.msra.gmra.mrb[0].mxu0 %vm214_vm2, %v4752_v35  ;;  %v3319_v38 = vsel %vm3316_vm5, %v3313_v34, %v3315_v37  ;;  %4933 = vmatprep.mubr.msk.f32.mxu1 %vm5246_vm0, %v5245_v0 }
 0x127   : > { %3327 = vmatpush1.msra.mxu0 %v3317_v4  ;;  %4932 = vmatpush3.msra.mxu1 %v3319_v38 }
 0x128   : > { %v3475_v39 = vpop.permute.xlu0 %3474  ;;  %3390 = vmatprep.mubr.f32.mxu0 %v5245_v0  ;;  %4936 = vmatprep.subr.mxu1 %v5245_v0 }
 0x129   : > { %v3477_v1 = vpop.permute.xlu1 %3476 }
 0x12a   : > { %v3482_v5 = vsel %vm3480_vm6, %v3475_v39, %v3477_v1 }
 0x12b   : > { %3490 = vmatprep.subr.mxu0 %v3482_v5 }
 0x12c   : > { %v3473_v42 = vpop.permute.xlu0 %3472 }
 0x12d   : > { %v3481_v43 = vsel %vm3480_vm6, %v3473_v42, %v3475_v39  ;;  %4934 = vmatmul.mubr.msk.f32.vlgmr.msra.gmra.mrb[0].mxu1 %vm214_vm2, %v4755_v41  ;;  %v3479_v46 = vpop.permute.xlu1 %3478 }
 0x12e   : > { %4756 = vmatmul.mubr.msk.f32.vlgmr.msra.gmra.mrb[0].mxu0 %vm214_vm2, %v4755_v41  ;;  %v3483_v47 = vsel %vm3480_vm6, %v3477_v1, %v3479_v46  ;;  %4938 = vmatprep.mubr.msk.f32.mxu1 %vm5246_vm0, %v5245_v0 }
 0x12f   : > { %3491 = vmatpush1.msra.mxu0 %v3481_v43  ;;  %4937 = vmatpush3.msra.mxu1 %v3483_v47 }
 0x130   : > { %v3639_v48 = vpop.permute.xlu0 %3638  ;;  %3554 = vmatprep.mubr.f32.mxu0 %v5245_v0  ;;  %4941 = vmatprep.subr.mxu1 %v5245_v0 }
 0x131   : > { %v3641_v49 = vpop.permute.xlu1 %3640 }
 0x132   : > { %v3646_v51 = vsel %vm3644_vm7, %v3639_v48, %v3641_v49 }
 0x133   : > { %3654 = vmatprep.subr.mxu0 %v3646_v51 }
 0x134   : > { %v3637_v52 = vpop.permute.xlu0 %3636 }
 0x135   : > { %v3645_v53 = vsel %vm3644_vm7, %v3637_v52, %v3639_v48  ;;  %4939 = vmatmul.mubr.msk.f32.vlgmr.msra.gmra.mrb[0].mxu1 %vm214_vm2, %v4758_v50  ;;  %v3643_v54 = vpop.permute.xlu1 %3642 }
 0x136   : > { %4759 = vmatmul.mubr.msk.f32.vlgmr.msra.gmra.mrb[0].mxu0 %vm214_vm2, %v4758_v50  ;;  %v3647_v55 = vsel %vm3644_vm7, %v3641_v49, %v3643_v54  ;;  %4943 = vmatprep.mubr.msk.f32.mxu1 %vm5246_vm0, %v5245_v0 }
 0x137   : > { %3655 = vmatpush1.msra.mxu0 %v3645_v53  ;;  %4942 = vmatpush3.msra.mxu1 %v3647_v55 }
 0x138   : > { %3803 = vmatprep.subr.mxu0 %v5491_v40  ;;  %4946 = vmatprep.subr.mxu1 %v5245_v0 }
 0x139   : > { %3718 = vmatprep.mubr.f32.mxu0 %v5245_v0  ;;  %v3952_v56 = vpop.permute.xlu0 %3951 }
 0x13a   : > { %v3954_v58 = vpop.permute.xlu1 %3953 }
 0x13b   : > { %v3959_v60 = vsel %vm3957_vm8, %v3952_v56, %v3954_v58 }
 0x13d   : > { %4944 = vmatmul.mubr.msk.f32.vlgmr.msra.gmra.mrb[0].mxu1 %vm214_vm2, %v4761_v57  ;;  %v3950_v59 = vpop.permute.xlu0 %3949 }
 0x13e   : > { %4947 = vmatpush3.msra.mxu1 %v5506_v45  ;;  %4762 = vmatmul.mubr.msk.f32.vlgmr.msra.gmra.mrb[0].mxu0 %vm214_vm2, %v4761_v57  ;;  %v3958_v63 = vsel %vm3957_vm8, %v3950_v59, %v3952_v56 }
 0x13f   : > { %3804 = vmatpush1.msra.mxu0 %v5503_v44  ;;  %4948 = vmatprep.mubr.msk.f32.mxu1 %vm5246_vm0, %v5245_v0 }
 0x140   : > { %3867 = vmatprep.mubr.f32.mxu0 %v5245_v0  ;;  %3967 = vmatprep.subr.mxu0 %v3959_v60 }
 0x141   : > { %v3956_v40 = vpop.permute.xlu1 %3955  ;;  %4951 = vmatprep.subr.mxu1 %v5245_v0 }
 0x142   : > { %v4116_v62 = vpop.permute.xlu0 %4115  ;;  %v3960_v45 = vsel %vm3957_vm8, %v3954_v58, %v3956_v40 }
 0x145   : > { %4949 = vmatmul.mubr.msk.f32.vlgmr.msra.gmra.mrb[0].mxu1 %vm214_vm2, %v4764_v61  ;;  %v4118_v44 = vpop.permute.xlu1 %4117 }
 0x146   : > { %4765 = vmatmul.mubr.msk.f32.vlgmr.msra.gmra.mrb[0].mxu0 %vm214_vm2, %v4764_v61  ;;  %4952 = vmatpush3.msra.mxu1 %v3960_v45  ;;  %v4123_v6 = vsel %vm4121_vm9, %v4116_v62, %v4118_v44 }
 0x147   : > { %3968 = vmatpush1.msra.mxu0 %v3958_v63  ;;  %4953 = vmatprep.mubr.msk.f32.mxu1 %vm5246_vm0, %v5245_v0 }
 0x148   : > { %4031 = vmatprep.mubr.f32.mxu0 %v5245_v0  ;;  %v4114_v7 = vpop.permute.xlu0 %4113  ;;  %4131 = vmatprep.subr.mxu0 %v4123_v6 }
 0x149   : > { %v4120_v8 = vpop.permute.xlu1 %4119  ;;  %4956 = vmatprep.subr.mxu1 %v5245_v0  ;;  %v4122_v11 = vsel %vm4121_vm9, %v4114_v7, %v4116_v62 }
 0x14a   : > { %v4124_v10 = vsel %vm4121_vm9, %v4118_v44, %v4120_v8 }
 0x14c   : > { %v4280_v12 = vpop.permute.xlu0 %4279 }
 0x14d   : > { %4954 = vmatmul.mubr.msk.f32.vlgmr.msra.gmra.mrb[0].mxu1 %vm214_vm2, %v4767_v9  ;;  %v4282_v13 = vpop.permute.xlu1 %4281 }
 0x14e   : > { %4768 = vmatmul.mubr.msk.f32.vlgmr.msra.gmra.mrb[0].mxu0 %vm214_vm2, %v4767_v9  ;;  %4957 = vmatpush3.msra.mxu1 %v4124_v10  ;;  %v4287_v14 = vsel %vm4285_vm10, %v4280_v12, %v4282_v13 }
 0x14f   : > { %4132 = vmatpush1.msra.mxu0 %v4122_v11  ;;  %4958 = vmatprep.mubr.msk.f32.mxu1 %vm5246_vm0, %v5245_v0 }
 0x150   : > { %4195 = vmatprep.mubr.f32.mxu0 %v5245_v0  ;;  %v4278_v2 = vpop.permute.xlu0 %4277  ;;  %4295 = vmatprep.subr.mxu0 %v4287_v14 }
 0x151   : > { %v4284_v15 = vpop.permute.xlu1 %4283  ;;  %4961 = vmatprep.subr.mxu1 %v5245_v0  ;;  %v4286_v18 = vsel %vm4285_vm10, %v4278_v2, %v4280_v12 }
 0x152   : > { %v4288_v17 = vsel %vm4285_vm10, %v4282_v13, %v4284_v15 }
 0x154   : > { %v4444_v19 = vpop.permute.xlu0 %4443 }
 0x155   : > { %4959 = vmatmul.mubr.msk.f32.vlgmr.msra.gmra.mrb[0].mxu1 %vm214_vm2, %v4770_v16  ;;  %v4446_v20 = vpop.permute.xlu1 %4445 }
 0x156   : > { %4771 = vmatmul.mubr.msk.f32.vlgmr.msra.gmra.mrb[0].mxu0 %vm214_vm2, %v4770_v16  ;;  %4962 = vmatpush3.msra.mxu1 %v4288_v17  ;;  %v4451_v21 = vsel %vm4449_vm11, %v4444_v19, %v4446_v20 }
 0x157   : > { %4296 = vmatpush1.msra.mxu0 %v4286_v18  ;;  %4963 = vmatprep.mubr.msk.f32.mxu1 %vm5246_vm0, %v5245_v0 }
 0x158   : > { %4359 = vmatprep.mubr.f32.mxu0 %v5245_v0  ;;  %4459 = vmatprep.subr.mxu0 %v4451_v21  ;;  %v4442_v22 = vpop.permute.xlu0 %4441 }
 0x159   : > { %v4448_v23 = vpop.permute.xlu1 %4447  ;;  %4966 = vmatprep.subr.mxu1 %v5245_v0  ;;  %v4450_v26 = vsel %vm4449_vm11, %v4442_v22, %v4444_v19 }
 0x15a   : > { %v4452_v25 = vsel %vm4449_vm11, %v4446_v20, %v4448_v23 }
 0x15d   : > { %4964 = vmatmul.mubr.msk.f32.vlgmr.msra.gmra.mrb[0].mxu1 %vm214_vm2, %v4773_v24 }
 0x15e   : > { %4774 = vmatmul.mubr.msk.f32.vlgmr.msra.gmra.mrb[0].mxu0 %vm214_vm2, %v4773_v24  ;;  %4967 = vmatpush3.msra.mxu1 %v4452_v25 }
 0x15f   : > { %4460 = vmatpush1.msra.mxu0 %v4450_v26  ;;  %4968 = vmatprep.mubr.msk.f32.mxu1 %vm5246_vm0, %v5245_v0 }
 0x160   : > { %4523 = vmatprep.mubr.f32.mxu0 %v5245_v0 }
 0x165   : > { %4969 = vmatmul.mubr.msk.f32.vlgmr.msra.gmra.mrb[0].mxu1 %vm214_vm2, %v4776_v27 }
 0x166   : > { %4777 = vmatmul.mubr.msk.f32.vlgmr.msra.gmra.mrb[0].mxu0 %vm214_vm2, %v4776_v27 }
 0x169   : > { %v188_v28 = vpop.permute.xlu0 %187 }
 0x238   : > { %v4596_v29 = vpop.f32.mrb[0].mxu1 }
 0x239   : > { %v4973_v30 = vadd.f32 %v4596_v29, %v188_v28  ;;  %v4525_v31 = vpop.f32.mrb[0].mxu0  ;;  %v4970_v32 = vpop.f32.mrb[1].mxu1 }
 0x23a   : > { %v4971_v0 = vadd.f32 %v4525_v31, %v188_v28  ;;  %v4527_v33 = vpop.f32.mrb[1].mxu0 }
 0x23b   : > { %4605 = vst [vmem:[%s177_s4 + $0x10] sm:$0xff] %v4973_v30  ;;  %v4972_v34 = vadd.f32 %v4527_v33, %v188_v28 }
 0x23c   : > { %4603 = vst [vmem:[%s177_s4] sm:$0xff] %v4971_v0 }
 0x23d   : > { %4604 = vst [vmem:[%s177_s4 + $0x8] sm:$0xff] %v4972_v34 }
 0x23e   : > { %5178 = shalt.err (!%p5175_p5)
}
 0x23f   : > { %s5179_s18 = scalar_lea.hbm %s5788_s7, 384  ;;  %s5183_s23 = scalar_lea.hbm %s5838_s3, 768 }
 0x240   : > { %p5180_p6 = scmp.ne.s32.totalorder %s5788_s7, %s5179_s18  ;;  %p5184_p10 = scmp.lt.u32.totalorder %s5788_s7, %s5838_s3 }
 0x241   : > { %p5185_p11 = scmp.lt.u32.totalorder %s5183_s23, %s5179_s18  ;;  %p5187_p13 = scmp.lt.u32.totalorder %s5179_s18, %s5788_s7 }
 0x242   : > { %p5181_p7 = pnand %p5180_p6, %p5334_p4 }
 0x243   : > { %p5186_p12 = por %p5185_p11, %p5184_p10 }
 0x244   : > { %p5182_p9 = pneg %p5181_p7 }
 0x245   : > { %p5188_p0 = por %p5187_p13, %p5186_p12 }
 0x247   : > { %p5189_p1 = pnand %p5188_p0, %p5182_p9 }
 0x249   : > { %5192 = shalt.err (!%p5189_p1)
}
 0x24a   : > { %5081 = dma.vmem_to_hbm [thread:$0]  (%p5334_p4), %s5790_s30, 384, %s5788_s7, %s4607_s15  }
 0x24b PF: > { %p5087_p2 = scmp.ge.s32.totalorder %s5243_s17, 2  ;;  %s4635_s28 = sand.u32 1, %s5223_s12  }
 0x24c   : > { %s4636_s29 = scalar_lea.sflag [#allocation3], %s4635_s28 }
 0x24d   : > { %p5084_p3 = pnand %p5087_p2, %p5341_p8 }
 0x24f   : > { %5218 = dma.done.wait (!%p5084_p3), %s4636_s29, 384  }
 0x250   : > { %5220 = vsyncadd (!%p5084_p3), %s4636_s29, 4294966912  ;;  %s16_s17 = sadd.s32 1, %s5243_s17   ;;  %s5841_s12 = smov %s5227_s13 }
 0x251   : > { %p13_p5 = scmp.ge.s32.totalorder %s16_s17, 4   ;;  %s5842_s13 = smov %s5231_s14 }
 0x252   : > { %s5843_s14 = smov %s5347_s25  ;;  %s5844_s15 = smov %s5239_s16 }
 0x253   : > { %s5845_s16 = smov %s5847_s20  ;;  %15 = sbr.rel (!%p13_p5) target bundleno = 4 (0x4), region = 93 }
 0x25a   :  { %4641 = vsyncpa [#allocation3], 1 }
 0x25b   :  { %4643 = vsyncpa [#allocation3 + $0x1], 1 }

</bundles_post_ra>
